<compile_context>
chip_gen: v7x
topology: tpu7x:2x2x1
jax: 0.10.0
libtpu: 0.0.40
codegen_flags: <defaults>
</compile_context>

<pallas_src>
import jax
import jax.numpy as jnp
from jax.experimental import pallas as pl
from jax.experimental.pallas import tpu as pltpu


# ----------------------------------------------------------------------------
# Fused kernel: for one batch-row tile, run every synthetic encoder layer and
# masked-mean-pool every hidden state (embeddings + L layers).
# ----------------------------------------------------------------------------
def _fused_encoder_pool_kernel(hs0_ref, w_ref, b_ref, poolw_ref, out_ref):
    """hs0_ref  : (N, H)     f32  embedding rows for this tile (N = Bt * S)
       w_ref    : (L, H, H)  bf16 resident stacked layer weights
       b_ref    : (L, 1, H)  f32  resident stacked layer biases
       poolw_ref: (1, Bt, N) f32  block-diagonal masked-mean weights (this tile)
       out_ref  : (L+1, Bt, H) f32 pooled representation of every layer."""
    n_layers = w_ref.shape[0]
    pool_w = poolw_ref[0]                                   # (Bt, N)
    x = hs0_ref[...]                                        # (N, H) f32

    # Hidden state 0 (embeddings): pooled = pool_w @ x (MXU contraction; the
    # 1/seq_len normalization is pre-folded into pool_w).
    out_ref[0] = jnp.dot(pool_w, x, preferred_element_type=jnp.float32)

    # Encoder layers, fully unrolled (static trip count): x <- tanh(xW+b) + x.
    for l in range(n_layers):
        y = jnp.dot(x.astype(jnp.bfloat16), w_ref[l],
                    preferred_element_type=jnp.float32) + b_ref[l]
        x = jnp.tanh(y) + x
        out_ref[l + 1] = jnp.dot(pool_w, x, preferred_element_type=jnp.float32)


def encode_and_pool(hs0_flat, w_stack, b_stack, pool_w):
    """hs0_flat: (B*S, H) f32, w_stack: (L, H, H) bf16, b_stack: (L, 1, H) f32,
    pool_w: (n_tiles, Bt, Bt*S) f32  ->  pooled (L+1, B, H) f32."""
    N_total, H = hs0_flat.shape
    L = w_stack.shape[0]
    n_tiles, Bt, N = pool_w.shape
    assert N_total == n_tiles * N
    B = n_tiles * Bt

    # VMEM budget derived from actual buffer bytes (+ headroom) so the same
    # code stays portable across v5e/v6e (128 MiB) and v7x (64 MiB).
    vmem_bytes = (
        2 * N * H * 4                  # hs0 tile (double-buffered)
        + L * H * H * 2                # resident bf16 weights
        + L * 1 * H * 4                # resident f32 biases
        + 2 * Bt * N * 4               # pool-weight tile (double-buffered)
        + 2 * (L + 1) * Bt * H * 4     # output tile (double-buffered)
        + (4 << 20)                    # compiler-internal scratch / headroom
    )

    return pl.pallas_call(
        _fused_encoder_pool_kernel,
        out_shape=jax.ShapeDtypeStruct((L + 1, B, H), jnp.float32),
        grid_spec=pltpu.PrefetchScalarGridSpec(
            num_scalar_prefetch=0,
            grid=(n_tiles,),                                  # batch-row tiles
            in_specs=[
                # Embedding rows for this batch tile.
                pl.BlockSpec((N, H), lambda t: (t, 0)),
                # Full weight/bias stacks: constant block index -> resident.
                pl.BlockSpec((L, H, H), lambda t: (0, 0, 0)),
                pl.BlockSpec((L, 1, H), lambda t: (0, 0, 0)),
                # Per-tile pooling weights (normalization pre-folded).
                pl.BlockSpec((1, Bt, N), lambda t: (t, 0, 0)),
            ],
            out_specs=pl.BlockSpec((L + 1, Bt, H), lambda t: (0, t, 0)),
        ),
        compiler_params=pltpu.CompilerParams(
            dimension_semantics=("parallel",),     # no cross-tile state
            vmem_limit_bytes=int(vmem_bytes),
        ),
    )(hs0_flat, w_stack, b_stack, pool_w)


# ----------------------------------------------------------------------------
# Driver
# ----------------------------------------------------------------------------
if __name__ == "__main__":
    B, S, H = 16, 32, 128         # H = 128 lanes (lane-dense output)
    BATCH_TILE = 8                # 8 sublanes per batch tile -> 2 parallel tiles
    VOCAB, NUM_LAYERS = 100, 4    # -> 5 hidden states (embeddings + 4 layers)
    n_tiles = B // BATCH_TILE

    key = jax.random.PRNGKey(0)
    k_emb, k_ids, k_w, k_b = jax.random.split(key, 4)

    # Deterministic synthetic "tokenizer" output: token ids + padding mask.
    # TODO(synk): HF tokenizer (string processing) and the pretrained
    # RoBERTa/BERT checkpoint are not translatable; replaced by deterministic
    # synthetic token ids / embedding table / residual tanh-MLP layers.
    seq_lens = (1 + (jnp.arange(B) * 7) % S).astype(jnp.int32)       # in [1, S]
    attention_mask = (jnp.arange(S)[None, :] < seq_lens[:, None]).astype(jnp.float32)
    token_ids = jax.random.randint(k_ids, (B, S), 1, VOCAB)
    token_ids = token_ids * attention_mask.astype(jnp.int32)          # pad id = 0

    emb_table = jax.random.normal(k_emb, (VOCAB, H), jnp.float32) * 0.02
    hs0 = emb_table[token_ids]                                        # (B, S, H)
    hs0_flat = hs0.reshape(B * S, H)

    # Stacked synthetic encoder weights (bf16 MXU operands) and biases (f32).
    w_stack = (jax.random.normal(k_w, (NUM_LAYERS, H, H), jnp.float32)
               / jnp.sqrt(H)).astype(jnp.bfloat16)
    b_stack = jax.random.normal(k_b, (NUM_LAYERS, 1, H), jnp.float32) * 0.01

    # Per-batch-tile pooling weights (hoisted out of the kernel), with a
    # zero-length guard: pool_w[t, i, j*S+s] = (i==j) * mask[b,s] / seq_len[b]
    # for global batch row b = t*BATCH_TILE + i.  Total bytes O(B * Bt * S).
    lens = jnp.maximum(attention_mask.sum(axis=1), 1.0)               # (B,)
    wnorm = attention_mask / lens[:, None]                            # (B, S)
    wnorm_t = wnorm.reshape(n_tiles, BATCH_TILE, S)
    eye = jnp.eye(BATCH_TILE, dtype=jnp.float32)
    pool_w = (eye[None, :, :, None] * wnorm_t[:, :, None, :]).reshape(
        n_tiles, BATCH_TILE, BATCH_TILE * S)                          # (T, Bt, Bt*S)

    # One fused Pallas call: encoder layers + per-layer masked mean pooling.
    pooled = encode_and_pool(hs0_flat, w_stack, b_stack, pool_w)      # (L+1, B, H)
    pooled = jax.block_until_ready(pooled)

    # Pure-JAX reference: same synthetic encoder math, then the exact
    # EncoderWrapper.forward pooling formula (hs*mask).sum(1) / seq_len.
    x_ref = hs0_flat
    hs_list = [x_ref.reshape(B, S, H)]
    for l in range(NUM_LAYERS):
        y = jnp.dot(x_ref.astype(jnp.bfloat16), w_stack[l],
                    preferred_element_type=jnp.float32) + b_stack[l]
        x_ref = jnp.tanh(y) + x_ref
        hs_list.append(x_ref.reshape(B, S, H))
    hs_stack = jnp.stack(hs_list, axis=0)                             # (L+1, B, S, H)
    ref = (hs_stack * attention_mask[None, :, :, None]).sum(axis=2) \
          / jnp.maximum(attention_mask.sum(axis=1), 1.0)[None, :, None]

    assert pooled.shape == (NUM_LAYERS + 1, B, H)
    assert jnp.allclose(pooled, ref, atol=1e-4, rtol=1e-3), "pooling mismatch"

    # Same return structure as the module: list of per-layer (B, H) arrays.
    mean_pooled_all_layers = [pooled[l] for l in range(pooled.shape[0])]
    assert len(mean_pooled_all_layers) == NUM_LAYERS + 1
    assert mean_pooled_all_layers[0].shape == (B, H)

    print("KERNEL_OK")
</pallas_src>

<mosaic_0001>
module attributes {stable_mosaic.version = 11 : i64} {
  func.func @_fused_encoder_pool_kernel(%arg0: i32, %arg1: memref<256x128xf32, #tpu.memory_space<vmem>>, %arg2: memref<4x128x128xbf16, #tpu.memory_space<vmem>>, %arg3: memref<4x1x128xf32, #tpu.memory_space<vmem>>, %arg4: memref<1x8x256xf32, #tpu.memory_space<vmem>>, %arg5: memref<5x8x128xf32, #tpu.memory_space<vmem>>) attributes {dimension_semantics = [#tpu.dimension_semantics<parallel>], iteration_bounds = array<i64: 2>, scalar_prefetch = 0 : i64, scratch_operands = 0 : i64, tpu.core_type = #tpu.core_type<tc>, window_params = [{transform_indices = @transform_0, window_bounds = array<i64: 256, 128>}, {pipeline_mode = #tpu.pipeline_mode<synchronous>, transform_indices = @transform_1, window_bounds = array<i64: 4, 128, 128>}, {pipeline_mode = #tpu.pipeline_mode<synchronous>, transform_indices = @transform_2, window_bounds = array<i64: 4, 1, 128>}, {transform_indices = @transform_3, window_bounds = array<i64: 1, 8, 256>}, {transform_indices = @transform_4, window_bounds = array<i64: 5, 8, 128>}]} {
    %c0 = arith.constant 0 : index
    %c0_0 = arith.constant 0 : index
    %c0_1 = arith.constant 0 : index
    %0 = vector.load %arg4[%c0, %c0_0, %c0_1] : memref<1x8x256xf32, #tpu.memory_space<vmem>>, vector<1x8x256xf32>
    %1 = vector.shape_cast %0 : vector<1x8x256xf32> to vector<8x256xf32>
    %c0_2 = arith.constant 0 : index
    %c0_3 = arith.constant 0 : index
    %2 = vector.load %arg1[%c0_2, %c0_3] : memref<256x128xf32, #tpu.memory_space<vmem>>, vector<256x128xf32>
    %cst = arith.constant dense<0.000000e+00> : vector<8x128xf32>
    %3 = tpu.matmul %1, %2, %cst {dimension_numbers = #tpu.dot_dimension_numbers<[1], [0], [0], [1], [0, 0, 1, 1], [], []>} : vector<8x256xf32>, vector<256x128xf32>, vector<8x128xf32> -> vector<8x128xf32>
    %c0_4 = arith.constant 0 : index
    %c0_5 = arith.constant 0 : index
    %c0_6 = arith.constant 0 : index
    %4 = vector.load %arg5[%c0_4, %c0_5, %c0_6] : memref<5x8x128xf32, #tpu.memory_space<vmem>>, vector<1x8x128xf32>
    %5 = vector.shape_cast %4 : vector<1x8x128xf32> to vector<8x128xf32>
    %6 = vector.shape_cast %3 : vector<8x128xf32> to vector<1x8x128xf32>
    tpu.vector_store %arg5[%c0_4, %c0_5, %c0_6], %6 {strides = array<i32>} : memref<5x8x128xf32, #tpu.memory_space<vmem>>, vector<1x8x128xf32>,
    %7 = arith.truncf %2 : vector<256x128xf32> to vector<256x128xbf16>
    %c0_7 = arith.constant 0 : index
    %c0_8 = arith.constant 0 : index
    %c0_9 = arith.constant 0 : index
    %8 = vector.load %arg2[%c0_7, %c0_8, %c0_9] : memref<4x128x128xbf16, #tpu.memory_space<vmem>>, vector<1x128x128xbf16>
    %9 = vector.shape_cast %8 : vector<1x128x128xbf16> to vector<128x128xbf16>
    %cst_10 = arith.constant dense<0.000000e+00> : vector<256x128xf32>
    %10 = tpu.matmul %7, %9, %cst_10 {dimension_numbers = #tpu.dot_dimension_numbers<[1], [0], [0], [1], [0, 0, 1, 1], [], []>} : vector<256x128xbf16>, vector<128x128xbf16>, vector<256x128xf32> -> vector<256x128xf32>
    %c0_11 = arith.constant 0 : index
    %c0_12 = arith.constant 0 : index
    %c0_13 = arith.constant 0 : index
    %11 = vector.load %arg3[%c0_11, %c0_12, %c0_13] : memref<4x1x128xf32, #tpu.memory_space<vmem>>, vector<1x1x128xf32>
    %12 = vector.shape_cast %11 : vector<1x1x128xf32> to vector<1x128xf32>
    %13 = vector.broadcast %12 : vector<1x128xf32> to vector<256x128xf32>
    %14 = arith.addf %10, %13 : vector<256x128xf32>
    %15 = math.tanh %14 : vector<256x128xf32>
    %16 = arith.addf %15, %2 : vector<256x128xf32>
    %cst_14 = arith.constant dense<0.000000e+00> : vector<8x128xf32>
    %17 = tpu.matmul %1, %16, %cst_14 {dimension_numbers = #tpu.dot_dimension_numbers<[1], [0], [0], [1], [0, 0, 1, 1], [], []>} : vector<8x256xf32>, vector<256x128xf32>, vector<8x128xf32> -> vector<8x128xf32>
    %c1 = arith.constant 1 : index
    %c0_15 = arith.constant 0 : index
    %c0_16 = arith.constant 0 : index
    %18 = vector.load %arg5[%c1, %c0_15, %c0_16] : memref<5x8x128xf32, #tpu.memory_space<vmem>>, vector<1x8x128xf32>
    %19 = vector.shape_cast %18 : vector<1x8x128xf32> to vector<8x128xf32>
    %20 = vector.shape_cast %17 : vector<8x128xf32> to vector<1x8x128xf32>
    tpu.vector_store %arg5[%c1, %c0_15, %c0_16], %20 {strides = array<i32>} : memref<5x8x128xf32, #tpu.memory_space<vmem>>, vector<1x8x128xf32>,
    %21 = arith.truncf %16 : vector<256x128xf32> to vector<256x128xbf16>
    %c1_17 = arith.constant 1 : index
    %c0_18 = arith.constant 0 : index
    %c0_19 = arith.constant 0 : index
    %22 = vector.load %arg2[%c1_17, %c0_18, %c0_19] : memref<4x128x128xbf16, #tpu.memory_space<vmem>>, vector<1x128x128xbf16>
    %23 = vector.shape_cast %22 : vector<1x128x128xbf16> to vector<128x128xbf16>
    %cst_20 = arith.constant dense<0.000000e+00> : vector<256x128xf32>
    %24 = tpu.matmul %21, %23, %cst_20 {dimension_numbers = #tpu.dot_dimension_numbers<[1], [0], [0], [1], [0, 0, 1, 1], [], []>} : vector<256x128xbf16>, vector<128x128xbf16>, vector<256x128xf32> -> vector<256x128xf32>
    %c1_21 = arith.constant 1 : index
    %c0_22 = arith.constant 0 : index
    %c0_23 = arith.constant 0 : index
    %25 = vector.load %arg3[%c1_21, %c0_22, %c0_23] : memref<4x1x128xf32, #tpu.memory_space<vmem>>, vector<1x1x128xf32>
    %26 = vector.shape_cast %25 : vector<1x1x128xf32> to vector<1x128xf32>
    %27 = vector.broadcast %26 : vector<1x128xf32> to vector<256x128xf32>
    %28 = arith.addf %24, %27 : vector<256x128xf32>
    %29 = math.tanh %28 : vector<256x128xf32>
    %30 = arith.addf %29, %16 : vector<256x128xf32>
    %cst_24 = arith.constant dense<0.000000e+00> : vector<8x128xf32>
    %31 = tpu.matmul %1, %30, %cst_24 {dimension_numbers = #tpu.dot_dimension_numbers<[1], [0], [0], [1], [0, 0, 1, 1], [], []>} : vector<8x256xf32>, vector<256x128xf32>, vector<8x128xf32> -> vector<8x128xf32>
    %c2 = arith.constant 2 : index
    %c0_25 = arith.constant 0 : index
    %c0_26 = arith.constant 0 : index
    %32 = vector.load %arg5[%c2, %c0_25, %c0_26] : memref<5x8x128xf32, #tpu.memory_space<vmem>>, vector<1x8x128xf32>
    %33 = vector.shape_cast %32 : vector<1x8x128xf32> to vector<8x128xf32>
    %34 = vector.shape_cast %31 : vector<8x128xf32> to vector<1x8x128xf32>
    tpu.vector_store %arg5[%c2, %c0_25, %c0_26], %34 {strides = array<i32>} : memref<5x8x128xf32, #tpu.memory_space<vmem>>, vector<1x8x128xf32>,
    %35 = arith.truncf %30 : vector<256x128xf32> to vector<256x128xbf16>
    %c2_27 = arith.constant 2 : index
    %c0_28 = arith.constant 0 : index
    %c0_29 = arith.constant 0 : index
    %36 = vector.load %arg2[%c2_27, %c0_28, %c0_29] : memref<4x128x128xbf16, #tpu.memory_space<vmem>>, vector<1x128x128xbf16>
    %37 = vector.shape_cast %36 : vector<1x128x128xbf16> to vector<128x128xbf16>
    %cst_30 = arith.constant dense<0.000000e+00> : vector<256x128xf32>
    %38 = tpu.matmul %35, %37, %cst_30 {dimension_numbers = #tpu.dot_dimension_numbers<[1], [0], [0], [1], [0, 0, 1, 1], [], []>} : vector<256x128xbf16>, vector<128x128xbf16>, vector<256x128xf32> -> vector<256x128xf32>
    %c2_31 = arith.constant 2 : index
    %c0_32 = arith.constant 0 : index
    %c0_33 = arith.constant 0 : index
    %39 = vector.load %arg3[%c2_31, %c0_32, %c0_33] : memref<4x1x128xf32, #tpu.memory_space<vmem>>, vector<1x1x128xf32>
    %40 = vector.shape_cast %39 : vector<1x1x128xf32> to vector<1x128xf32>
    %41 = vector.broadcast %40 : vector<1x128xf32> to vector<256x128xf32>
    %42 = arith.addf %38, %41 : vector<256x128xf32>
    %43 = math.tanh %42 : vector<256x128xf32>
    %44 = arith.addf %43, %30 : vector<256x128xf32>
    %cst_34 = arith.constant dense<0.000000e+00> : vector<8x128xf32>
    %45 = tpu.matmul %1, %44, %cst_34 {dimension_numbers = #tpu.dot_dimension_numbers<[1], [0], [0], [1], [0, 0, 1, 1], [], []>} : vector<8x256xf32>, vector<256x128xf32>, vector<8x128xf32> -> vector<8x128xf32>
    %c3 = arith.constant 3 : index
    %c0_35 = arith.constant 0 : index
    %c0_36 = arith.constant 0 : index
    %46 = vector.load %arg5[%c3, %c0_35, %c0_36] : memref<5x8x128xf32, #tpu.memory_space<vmem>>, vector<1x8x128xf32>
    %47 = vector.shape_cast %46 : vector<1x8x128xf32> to vector<8x128xf32>
    %48 = vector.shape_cast %45 : vector<8x128xf32> to vector<1x8x128xf32>
    tpu.vector_store %arg5[%c3, %c0_35, %c0_36], %48 {strides = array<i32>} : memref<5x8x128xf32, #tpu.memory_space<vmem>>, vector<1x8x128xf32>,
    %49 = arith.truncf %44 : vector<256x128xf32> to vector<256x128xbf16>
    %c3_37 = arith.constant 3 : index
    %c0_38 = arith.constant 0 : index
    %c0_39 = arith.constant 0 : index
    %50 = vector.load %arg2[%c3_37, %c0_38, %c0_39] : memref<4x128x128xbf16, #tpu.memory_space<vmem>>, vector<1x128x128xbf16>
    %51 = vector.shape_cast %50 : vector<1x128x128xbf16> to vector<128x128xbf16>
    %cst_40 = arith.constant dense<0.000000e+00> : vector<256x128xf32>
    %52 = tpu.matmul %49, %51, %cst_40 {dimension_numbers = #tpu.dot_dimension_numbers<[1], [0], [0], [1], [0, 0, 1, 1], [], []>} : vector<256x128xbf16>, vector<128x128xbf16>, vector<256x128xf32> -> vector<256x128xf32>
    %c3_41 = arith.constant 3 : index
    %c0_42 = arith.constant 0 : index
    %c0_43 = arith.constant 0 : index
    %53 = vector.load %arg3[%c3_41, %c0_42, %c0_43] : memref<4x1x128xf32, #tpu.memory_space<vmem>>, vector<1x1x128xf32>
    %54 = vector.shape_cast %53 : vector<1x1x128xf32> to vector<1x128xf32>
    %55 = vector.broadcast %54 : vector<1x128xf32> to vector<256x128xf32>
    %56 = arith.addf %52, %55 : vector<256x128xf32>
    %57 = math.tanh %56 : vector<256x128xf32>
    %58 = arith.addf %57, %44 : vector<256x128xf32>
    %cst_44 = arith.constant dense<0.000000e+00> : vector<8x128xf32>
    %59 = tpu.matmul %1, %58, %cst_44 {dimension_numbers = #tpu.dot_dimension_numbers<[1], [0], [0], [1], [0, 0, 1, 1], [], []>} : vector<8x256xf32>, vector<256x128xf32>, vector<8x128xf32> -> vector<8x128xf32>
    %c4 = arith.constant 4 : index
    %c0_45 = arith.constant 0 : index
    %c0_46 = arith.constant 0 : index
    %60 = vector.load %arg5[%c4, %c0_45, %c0_46] : memref<5x8x128xf32, #tpu.memory_space<vmem>>, vector<1x8x128xf32>
    %61 = vector.shape_cast %60 : vector<1x8x128xf32> to vector<8x128xf32>
    %62 = vector.shape_cast %59 : vector<8x128xf32> to vector<1x8x128xf32>
    tpu.vector_store %arg5[%c4, %c0_45, %c0_46], %62 {strides = array<i32>} : memref<5x8x128xf32, #tpu.memory_space<vmem>>, vector<1x8x128xf32>,
    return
  }
  func.func @transform_0(%arg0: i32) -> (i32, i32) {
    %c0_i32 = arith.constant 0 : i32
    %c0_i32_0 = arith.constant 0 : i32
    return %arg0, %c0_i32 : i32, i32
  }
  func.func @transform_1(%arg0: i32) -> (i32, i32, i32) {
    %c0_i32 = arith.constant 0 : i32
    %c0_i32_0 = arith.constant 0 : i32
    %c0_i32_1 = arith.constant 0 : i32
    %c0_i32_2 = arith.constant 0 : i32
    return %c0_i32, %c0_i32_0, %c0_i32_1 : i32, i32, i32
  }
  func.func @transform_2(%arg0: i32) -> (i32, i32, i32) {
    %c0_i32 = arith.constant 0 : i32
    %c0_i32_0 = arith.constant 0 : i32
    %c0_i32_1 = arith.constant 0 : i32
    %c0_i32_2 = arith.constant 0 : i32
    return %c0_i32, %c0_i32_0, %c0_i32_1 : i32, i32, i32
  }
  func.func @transform_3(%arg0: i32) -> (i32, i32, i32) {
    %c0_i32 = arith.constant 0 : i32
    %c0_i32_0 = arith.constant 0 : i32
    %c0_i32_1 = arith.constant 0 : i32
    return %arg0, %c0_i32, %c0_i32_0 : i32, i32, i32
  }
  func.func @transform_4(%arg0: i32) -> (i32, i32, i32) {
    %c0_i32 = arith.constant 0 : i32
    %c0_i32_0 = arith.constant 0 : i32
    %c0_i32_1 = arith.constant 0 : i32
    return %c0_i32, %arg0, %c0_i32_0 : i32, i32, i32
  }
}

</mosaic_0001>

<bundles_post_ra>
// kernel: tpu_custom_call.1
= control target key start
LH: loop header
LB: loop body
LE: loop exit
PB: predicated region body
PF: predicated region fallthrough
CT: control target
= control target key end

     0   :  { %s4525_s0 = inlined_call_operand.hbm [shape: f32[512,128], index: 0, kind: input, shape index: {}]   ;;  %s4526_s1 = inlined_call_operand.hbm [shape: bf16[4,128,128], index: 1, kind: input, shape index: {}]   ;;  %s4527_s2 = inlined_call_operand.vmem [shape: f32[4,1,128], index: 2, kind: input, shape index: {}]   ;;  %s4528_s3 = inlined_call_operand.hbm [shape: f32[2,8,256], index: 3, kind: input, shape index: {}]   ;;  %s4529_s4 = inlined_call_operand.hbm [shape: f32[5,16,128], index: 4, kind: output, shape index: {}]  }
   0x1   :  { %4537 = sst [smem:[#allocation13_spill]] %s4525_s0 }
   0x2   :  { %9 = vsyncpa [#allocation3], 0 }
   0x3   :  { %11 = vsyncpa [#allocation3 + $0x1], 0 }
   0x4   :  { %12 = vsyncpa [#allocation6], 0 }
   0x5   :  { %13 = vsyncpa [#allocation4], 0 }
   0x6   :  { %15 = vsyncpa [#allocation4 + $0x1], 0  ;;  %s3276_s15 = smov 0   ;;  %s3278_s16 = smov 0  }
   0x7   :  { %s3280_s17 = smov 0   ;;  %s3282_s18 = smov 0  }
   0x8 LB: > { %s3297_s19 = sadd.s32 1, %s3238_s18   ;;  %s28_s20 = sadd.s32 1, %s3234_s17  ;;  %s3238_s18 = sphi %s3282_s18, %s4558_s18   ;;  %s3234_s17 = sphi %s3280_s17, %s4557_s17   ;;  %s3230_s16 = sphi %s3278_s16, %s4556_s16   ;;  %s3226_s15 = sphi %s3276_s15, %s4555_s15  }
   0x9   : > { %s25_s21 = ssub.s32 %s3238_s18, %s3297_s19  ;;  %p35_p0 = scmp.ne.s32.totalorder %s3234_s17, %s3230_s16 }
   0xa   : > { %p26_p1 = scmp.eq.s32.totalorder %s25_s21, 0  ;;  %p36_p2 = scmp.eq.s32.totalorder %s3238_s18, 0 }
   0xb   : > { %p2743_p4 = scmp.lt.s32.totalorder %s3238_s18, 2  ;;  %s175_s23 = sand.u32 1, %s3238_s18  }
   0xc   : > { %s3308_s22 = scalar_select %p26_p1, %s3234_s17, %s28_s20  }
   0xd   : > { %p37_p5 = por %p36_p2, %p35_p0  ;;  %s177_s24 = sand.u32 1, %s3234_s17  }
   0xe   : > { %s2035_s25 = sshll.u32 %s177_s24, 8  ;;  %s2091_s26 = sshll.u32 %s3238_s18, 12 }
   0xf   : > { %s4538_s0 = sld [smem:[#allocation13_spill]]  ;;  %s179_s30 = scalar_lea.vmem [#allocation2], %s2035_s25 }
  0x10   : > { %s186_s5 = sshll.u32 %s179_s30, 4  ;;  %p3323_p6 = pnand %p2743_p4, %p37_p5  ;;  %s3327_s5 = int_to_ptr.vmem [resolvable:$true] %s186_s5 }
  0x11   : > { %s3329_s7 = scalar_lea.sflag [#allocation3], %s175_s23 }
  0x12   : > { %s4539_s6 = scalar_select %p3323_p6, 1, 0 }
  0x13   : > { %p4531_p8 = pneg %p3323_p6 }
  0x15   : > { %s3321_s29 = scalar_lea.hbm %s4538_s0, %s2091_s26  ;;  %s3081_s11 = scalar_lea.hbm %s4538_s0, 8192 }
  0x16   : > { %s3076_s8 = scalar_lea.hbm %s3321_s29, 4096  ;;  %p3082_p11 = scmp.lt.u32.totalorder %s3321_s29, %s4538_s0 }
  0x17   : > { %p3077_p7 = scmp.ne.s32.totalorder %s3321_s29, %s3076_s8  ;;  %p3083_p12 = scmp.lt.u32.totalorder %s3081_s11, %s3076_s8 }
  0x18   : > { %p3085_p1 = scmp.lt.u32.totalorder %s3076_s8, %s3321_s29 }
  0x19   : > { %p3079_p9 = pnand %p4531_p8, %p3077_p7  ;;  %p3084_p13 = por %p3083_p12, %p3082_p11 }
  0x1b   : > { %p3080_p10 = pneg %p3079_p9  ;;  %p3086_p2 = por %p3085_p1, %p3084_p13 }
  0x1d   : > { %p3087_p4 = pnand %p3086_p2, %p3080_p10 }
  0x1f   : > { %3090 = shalt.err (!%p3087_p4)
}
  0x20   : > { %s3091_s14 = scalar_lea.vmem %s3327_s5, 4096  ;;  %s3240_s20 = smov [#allocation2]  }
  0x21   : > { %p3092_p5 = scmp.ne.s32.totalorder %s3327_s5, %s3091_s14  ;;  %s3096_s21 = sshll.u32 %s3240_s20, 4  ;;  %s3097_s21 = int_to_ptr.vmem [resolvable:$false] %s3096_s21 }
  0x22   : > { %s3098_s23 = scalar_lea.vmem %s3097_s21, 8192  ;;  %p3099_p3 = scmp.lt.s32.totalorder %s3327_s5, %s3097_s21 }
  0x23   : > { %p3094_p7 = pnand %p3092_p5, %p4531_p8  ;;  %p3100_p11 = scmp.lt.s32.totalorder %s3098_s23, %s3091_s14 }
  0x25   : > { %p3095_p9 = pneg %p3094_p7  ;;  %p3101_p12 = por %p3100_p11, %p3099_p3 }
  0x27   : > { %p3102_p13 = pnand %p3101_p12, %p3095_p9 }
  0x29   : > { %3105 = shalt.err (!%p3102_p13)
}
  0x2a   : > { %s3241_s25 = smov 128   ;;  %s3242_s26 = smov 8  }
  0x2b   : > { %2734 = dma.hbm_to_vmem [thread:$0]  (!%p3323_p6), %s3321_s29, 4096, %s3327_s5, %s3329_s7, %s3241_s25, %s3241_s25, %s3242_s26  }
  0x2c   : > { %s3358_s27 = sadd.s32 4294967295, %s3238_s18   ;;  %s2031_s28 = sadd.s32 4294967294, %s3238_s18  }
  0x2d   : > { %p41_p3 = scmp.ne.s32.totalorder %s3230_s16, %s3226_s15  ;;  %p4530_p10 = scmp.eq.s32.totalorder %s3358_s27, 0 }
  0x2e   : > { %p133_p1 = scmp.eq.s32.totalorder %s3358_s27, 1  ;;  %p139_p2 = scmp.eq.s32.totalorder %s2031_s28, 1 }
  0x2f   : > { %p3367_p4 = por %p4530_p10, %p41_p3  ;;  %p2032_p5 = scmp.ge.s32.totalorder %s3238_s18, 1 }
  0x30   : > { %p3375_p7 = por %p133_p1, %p35_p0  ;;  %p3379_p9 = por %p139_p2, %p41_p3 }
  0x31   : > { %s4540_s30 = scalar_select %p3367_p4, 1, 0 }
  0x32   : > { %s4541_s29 = scalar_select %p3375_p7, 1, 0 }
  0x33   : > { %s4542_s5 = scalar_select %p3379_p9, 1, 0 }
  0x34   : > { %p146_p11 = scmp.lt.s32.totalorder %s3238_s18, 3  ;;  %s3243_s9 = smov [#allocation5]  }
  0x35   : > { %s158_s10 = sshll.u32 %s3243_s9, 4  ;;  %s2038_s11 = sshll.u32 %s177_s24, 4  ;;  %s3388_s10 = int_to_ptr.vmem [resolvable:$true] %s158_s10 }
  0x36   : > { %p3384_p12 = pnand %p2032_p5, %p146_p11  ;;  %s2092_s12 = sshll.u32 %s3238_s18, 8 }
  0x37   : > { %s3404_s21 = scalar_lea.hbm %s4528_s3, %s2092_s12  ;;  %s200_s23 = scalar_lea.vmem [#allocation7], %s2038_s11 }
  0x38   : > { %s4543_s8 = scalar_select %p3384_p12, 1, 0 }
  0x39   : > { %p2727_p13 = pneg %p3384_p12  ;;  %s208_s25 = sshll.u32 %s200_s23, 4  ;;  %s3406_s25 = int_to_ptr.vmem [resolvable:$true] %s208_s25 }
  0x3a   : > { %s3106_s24 = scalar_lea.hbm %s4526_s1, 4096 }
  0x3b   : > { %p3397_p0 = pnand %p2727_p13, %p4530_p10  ;;  %p3107_p3 = scmp.ne.s32.totalorder %s4526_s1, %s3106_s24 }
  0x3c   : > { %p3113_p11 = scmp.lt.u32.totalorder %s3106_s24, %s4526_s1 }
  0x3d   : > { %p3108_p1 = pneg %p3397_p0 }
  0x3f   : > { %p3109_p2 = pnand %p3108_p1, %p3107_p3 }
  0x41   : > { %p3110_p5 = pneg %p3109_p2 }
  0x43   : > { %p3115_p13 = pnand %p3113_p11, %p3110_p5 }
  0x45   : > { %3118 = shalt.err (!%p3115_p13)
}
  0x46   : > { %s3119_s11 = scalar_lea.vmem %s3388_s10, 4096  ;;  %p3127_p7 = scmp.lt.s32.totalorder %s3388_s10, %s3388_s10 }
  0x47   : > { %p3120_p10 = scmp.ne.s32.totalorder %s3388_s10, %s3119_s11  ;;  %p3128_p4 = scmp.lt.s32.totalorder %s3119_s11, %s3119_s11 }
  0x49   : > { %p3122_p8 = pnand %p3120_p10, %p3108_p1  ;;  %p3129_p12 = por %p3128_p4, %p3127_p7 }
  0x4b   : > { %p3123_p9 = pneg %p3122_p8 }
  0x4d   : > { %p3130_p6 = pnand %p3129_p12, %p3123_p9 }
  0x4f   : > { %3133 = shalt.err (!%p3130_p6)
}
  0x50   : > { %s3244_s0 = smov 64   ;;  %s3245_s12 = smov 4  }
  0x51   : > { %2730 = dma.hbm_to_vmem [thread:$0]  (!%p3397_p0), %s4526_s1, 4096, %s3388_s10, [#allocation6], %s3244_s0, %s3244_s0, %s3245_s12  }
  0x52   : > { %s3134_s28 = scalar_lea.hbm %s3404_s21, 256  ;;  %p4545_p10 = scmp.ne.s32.totalorder %s4539_s6, 0 }
  0x53   : > { %p3135_p8 = scmp.ne.s32.totalorder %s3404_s21, %s3134_s28  ;;  %s3139_s14 = scalar_lea.hbm %s4528_s3, 512 }
  0x54   : > { %p4546_p4 = pneg %p4545_p10  ;;  %p3140_p9 = scmp.lt.u32.totalorder %s3404_s21, %s4528_s3 }
  0x55   : > { %p3141_p12 = scmp.lt.u32.totalorder %s3139_s14, %s3134_s28  ;;  %p3143_p1 = scmp.lt.u32.totalorder %s3134_s28, %s3404_s21 }
  0x56   : > { %p3137_p7 = pnand %p3135_p8, %p4546_p4 }
  0x57   : > { %p3142_p3 = por %p3141_p12, %p3140_p9 }
  0x58   : > { %p3138_p6 = pneg %p3137_p7 }
  0x59   : > { %p3144_p2 = por %p3143_p1, %p3142_p3 }
  0x5b   : > { %p3145_p5 = pnand %p3144_p2, %p3138_p6 }
  0x5d   : > { %3148 = shalt.err (!%p3145_p5)
}
  0x5e   : > { %s3149_s10 = scalar_lea.vmem %s3406_s25, 256  ;;  %p4547_p11 = pmov %p4546_p4 }
  0x5f   : > { %p3150_p0 = scmp.ne.s32.totalorder %s3406_s25, %s3149_s10  ;;  %s3246_s13 = smov [#allocation7]  }
  0x60   : > { %s3154_s0 = sshll.u32 %s3246_s13, 4  ;;  %s3155_s0 = int_to_ptr.vmem [resolvable:$false] %s3154_s0 }
  0x61   : > { %p3152_p13 = pnand %p3150_p0, %p4547_p11  ;;  %s3156_s12 = scalar_lea.vmem %s3155_s0, 512 }
  0x62   : > { %p3157_p4 = scmp.lt.s32.totalorder %s3406_s25, %s3155_s0  ;;  %p3158_p7 = scmp.lt.s32.totalorder %s3156_s12, %s3149_s10 }
  0x63   : > { %p3153_p8 = pneg %p3152_p13 }
  0x64   : > { %p3159_p9 = por %p3158_p7, %p3157_p4 }
  0x66   : > { %p3160_p12 = pnand %p3159_p9, %p3153_p8 }
  0x68   : > { %3163 = shalt.err (!%p3160_p12)
}
  0x69   : > { %2737 = dma.hbm_to_vmem [thread:$0]  (!%p4545_p10), %s3404_s21, 256, %s3406_s25, %s3329_s7  }
  0x6a   : > { %p4548_p6 = scmp.ne.s32.totalorder %s4543_s8, 0 }
  0x6b   : > { %s219_s23 = sand.u32 (!%p4548_p6), 1, %s3358_s27   ;;  %s3457_s26 = sand.u32 (!%p4548_p6), 1, %s3230_s16  }
  0x6c   : > { %217 = sbr.rel (%p4548_p6) target bundleno = 1700 (0x6a4), region = 36  ;;  %s2042_s28 = sshll.u32 (!%p4548_p6), %s3457_s26, 8 }
  0x6d   : > { %s220_s24 = scalar_lea.sflag (!%p4548_p6), [#allocation3], %s219_s23  ;;  %s3460_s9 = scalar_lea.vmem (!%p4548_p6), [#allocation2], %s2042_s28 }
  0x6e   : > { %p4549_p3 = scmp.ne.s32.totalorder (!%p4548_p6), %s4540_s30, 0 }
  0x73   : > { %3209 = dma.done.wait (%p4549_p3), %s220_s24, 4096  }
  0x74   : > { %3211 = vsyncadd (%p4549_p3), %s220_s24, 4294963200  ;;  %p4550_p10 = scmp.eq.s32.totalorder %s3358_s27, 0 }
  0x76   : > { %3213 = dma.done.wait (%p4550_p10), [#allocation6], 4096   ;;  %p4551_p1 = pmov %p4550_p10 }
  0x77   : > { %s2044_s6 = sshll.u32 %s3457_s26, 4 }
  0x78   : > { %3215 = vsyncadd (%p4551_p1), [#allocation6], 4294963200  ;;  %s3471_s7 = scalar_lea.vmem [#allocation7], %s2044_s6 }
  0x79   : > { %3217 = dma.done.wait (%p4549_p3), %s220_s24, 256  }
  0x7a   : > { %3219 = vsyncadd (%p4549_p3), %s220_s24, 4294967040  ;;  %v3478_v0 = vld [vmem:[%s3460_s9 + $0x80] sm:$0xff]  ;;  %v3481_v1 = vld [vmem:[%s3460_s9 + $0x88] sm:$0xff]  ;;  %s2716_s30 = smul.u32 40, %s3457_s26  ;;  %s2088_s23 = sshll.u32 %s3358_s27, 7 }
  0x7b   : > { %v3484_v2 = vld [vmem:[%s3460_s9] sm:$0xff]  ;;  %v3488_v3 = vpack.c.bf16 %v3481_v1, %v3478_v0  ;;  %v3491_v4 = vld [vmem:[%s3460_s9 + $0x8] sm:$0xff]  ;;  %v3494_v5 = vld [vmem:[%s3460_s9 + $0x90] sm:$0xff]  ;;  %s1916_s6 = scalar_lea.sflag [#allocation4], %s3457_s26  ;;  %p4552_p5 = scmp.ne.s32.totalorder %s4541_s29, 0 }
  0x7c   : > { %v3497_v6 = vld [vmem:[%s3460_s9 + $0x98] sm:$0xff]  ;;  %v3501_v7 = vpack.c.bf16 %v3491_v4, %v3484_v2  ;;  %v3508_v9 = vld [vmem:[%s3460_s9 + $0x10] sm:$0xff]  ;;  %v3514_v11 = vld [vmem:[%s3460_s9 + $0xa0] sm:$0xff]  ;;  %s3648_s8 = scalar_lea.vmem [#allocation8], %s2716_s30  ;;  %s3247_s27 = smov [#allocation8]  }
  0x7d   : > { %v3505_v8 = vpack.c.bf16 %v3497_v6, %v3494_v5  ;;  %v3511_v10 = vld [vmem:[%s3460_s9 + $0x18] sm:$0xff]  ;;  %2557 = vmatprep.subr.bf16.mxu1 %v3488_v3  ;;  %v3518_v12 = vld [vmem:[%s3460_s9 + $0xa8] sm:$0xff]  ;;  %v3531_v15 = vld [vmem:[%s3460_s9 + $0x20] sm:$0xff]  ;;  %s1928_s12 = sshll.u32 %s3648_s8, 4  ;;  %s3168_s30 = sshll.u32 %s3247_s27, 4  ;;  %s4475_s12 = int_to_ptr.vmem [resolvable:$true] %s1928_s12  ;;  %s3169_s30 = int_to_ptr.vmem [resolvable:$false] %s3168_s30 }
  0x7e   : > { %2559 = vmatpush3.bf16.msra.mxu1 %v3501_v7  ;;  %v3523_v13 = vpack.c.bf16 %v3511_v10, %v3508_v9  ;;  %v3528_v14 = vpack.c.bf16 %v3518_v12, %v3514_v11  ;;  %v3534_v16 = vld [vmem:[%s3460_s9 + $0x28] sm:$0xff]  ;;  %v3537_v17 = vld [vmem:[%s3460_s9 + $0xb0] sm:$0xff]  ;;  %v3540_v18 = vld [vmem:[%s3460_s9 + $0xb8] sm:$0xff]  ;;  %s3170_s21 = scalar_lea.vmem %s3169_s30, 1280  ;;  %p3171_p13 = scmp.lt.s32.totalorder %s4475_s12, %s3169_s30 }
  0x7f   : > { %2561 = vmatprep.subr.bf16.mxu1 %v3505_v8  ;;  %v3545_v19 = vpack.c.bf16 %v3534_v16, %v3531_v15  ;;  %v3550_v20 = vpack.c.bf16 %v3540_v18, %v3537_v17  ;;  %v3553_v21 = vld [vmem:[%s3460_s9 + $0x30] sm:$0xff]  ;;  %v3556_v22 = vld [vmem:[%s3460_s9 + $0x38] sm:$0xff]  ;;  %v3559_v23 = vld [vmem:[%s3460_s9 + $0xc0] sm:$0xff] }
  0x80   : > { %v3562_v24 = vld [vmem:[%s3460_s9 + $0xc8] sm:$0xff]  ;;  %v3568_v26 = vld [vmem:[%s3460_s9 + $0x40] sm:$0xff]  ;;  %v2570_v27 = vpack.c.bf16 %v3556_v22, %v3553_v21  ;;  %v3584_v30 = vld [vmem:[%s3460_s9 + $0xd0] sm:$0xff] }
  0x81   : > { %v3565_v25 = vld [vmem:[%s3471_s7 + $0x8] sm:$0xff]  ;;  %v3581_v29 = vpack.c.bf16 %v3562_v24, %v3559_v23  ;;  %v3590_v32 = vld [vmem:[%s3460_s9 + $0x50] sm:$0xff]  ;;  %v3601_v36 = vld [vmem:[%s3460_s9 + $0xe0] sm:$0xff] }
  0x82   : > { %2563 = vmatpush3.bf16.msra.mxu1 %v3523_v13  ;;  %366 = vmatprep.mubr.f32.mxu1 %v3565_v25  ;;  %v3576_v28 = vld [vmem:[%s3460_s9 + $0x48] sm:$0xff]  ;;  %v3587_v31 = vld [vmem:[%s3460_s9 + $0xd8] sm:$0xff]  ;;  %v3607_v38 = vld [vmem:[%s3460_s9 + $0x60] sm:$0xff] }
  0x83   : > { %2565 = vmatprep.subr.bf16.mxu1 %v3528_v14  ;;  %749 = vmatprep.mubr.f32.mxu0 %v3565_v25  ;;  %v2574_v33 = vpack.c.bf16 %v3576_v28, %v3568_v26  ;;  %v3595_v34 = vld [vmem:[%s3460_s9 + $0x58] sm:$0xff]  ;;  %v2576_v35 = vpack.c.bf16 %v3587_v31, %v3584_v30  ;;  %v3604_v37 = vld [vmem:[%s3460_s9 + $0xe8] sm:$0xff]  ;;  %v3615_v41 = vld [vmem:[%s3460_s9 + $0xf0] sm:$0xff] }
  0x84   : > { %v3610_v39 = vld [vmem:[%s3460_s9 + $0x68] sm:$0xff]  ;;  %v2578_v40 = vpack.c.bf16 %v3595_v34, %v3590_v32  ;;  %v3618_v42 = vld [vmem:[%s3460_s9 + $0xf8] sm:$0xff]  ;;  %v2580_v43 = vpack.c.bf16 %v3604_v37, %v3601_v36  ;;  %v3623_v44 = vld [vmem:[%s3460_s9 + $0x70] sm:$0xff] }
  0x85   : > { %v3626_v45 = vld [vmem:[%s3460_s9 + $0x78] sm:$0xff]  ;;  %v2582_v46 = vpack.c.bf16 %v3610_v39, %v3607_v38  ;;  %v2584_v47 = vpack.c.bf16 %v3618_v42, %v3615_v41  ;;  %v2786_v48 = vld [vmem:[#allocation5] sm:$0xff]   ;;  %v2787_v51 = vld [vmem:[#allocation5 + $0x8] sm:$0xff]   ;;  %s4480_s9 = scalar_lea.hbm %s4529_s4, %s2088_s23 }
  0x86   : > { %2567 = vmatpush3.bf16.msra.mxu1 %v3545_v19  ;;  %v2586_v49 = vpack.c.bf16 %v3626_v45, %v3623_v44  ;;  %v3635_v50 = vld [vmem:[%s3471_s7] sm:$0xff]  ;;  %v2789_v53 = vld [vmem:[#allocation5 + $0x18] sm:$0xff]   ;;  %v2791_v55 = vld [vmem:[#allocation5 + $0x28] sm:$0xff]  }
  0x87   : > { %2569 = vmatprep.subr.bf16.mxu1 %v3550_v20  ;;  %v2788_v52 = vld [vmem:[#allocation5 + $0x10] sm:$0xff]   ;;  %v2790_v54 = vld [vmem:[#allocation5 + $0x20] sm:$0xff]   ;;  %v2793_v57 = vld [vmem:[#allocation5 + $0x38] sm:$0xff]  }
  0x88   : > { %v2792_v56 = vld [vmem:[#allocation5 + $0x30] sm:$0xff]  }
  0x8a   : > { %2571 = vmatpush3.bf16.msra.mxu1 %v2570_v27 }
  0x8b   : > { %2573 = vmatprep.subr.bf16.mxu1 %v3581_v29 }
  0x8e   : > { %2575 = vmatpush3.bf16.msra.mxu1 %v2574_v33 }
  0x8f   : > { %2577 = vmatprep.subr.bf16.mxu1 %v2576_v35 }
  0x92   : > { %2579 = vmatpush3.bf16.msra.mxu1 %v2578_v40 }
  0x93   : > { %2581 = vmatprep.subr.bf16.mxu1 %v2580_v43 }
  0x96   : > { %2583 = vmatpush3.bf16.msra.mxu1 %v2582_v46 }
  0x97   : > { %2585 = vmatprep.subr.bf16.mxu1 %v2584_v47 }
  0x9a   : > { %2587 = vmatpush3.bf16.msra.mxu1 %v2586_v49 }
  0x9b   : > { %2364 = vmatprep.subr.bf16.mxu1 %v2786_v48 }
  0x9d   : > { %367 = vmatmul.mubr.f32.vlgmr.msra.gmra.mrb[0].mxu1 %v3635_v50 }
  0x9e   : > { %2365 = vmatpush3.bf16.msra.mxu1 %v2786_v48  ;;  %2380 = vmatprep.mubr.bf16.mxu1 %v3501_v7 }
  0x9f   : > { %2366 = vmatprep.subr.bf16.mxu1 %v2787_v51 }
  0xa2   : > { %2367 = vmatpush3.bf16.msra.mxu1 %v2787_v51 }
  0xa3   : > { %2368 = vmatprep.subr.bf16.mxu1 %v2788_v52 }
  0xa6   : > { %2369 = vmatpush3.bf16.msra.mxu1 %v2788_v52 }
  0xa7   : > { %2370 = vmatprep.subr.bf16.mxu1 %v2789_v53 }
  0xaa   : > { %2371 = vmatpush3.bf16.msra.mxu1 %v2789_v53 }
  0xab   : > { %2372 = vmatprep.subr.bf16.mxu1 %v2790_v54 }
  0xae   : > { %2373 = vmatpush3.bf16.msra.mxu1 %v2790_v54 }
  0xaf   : > { %2374 = vmatprep.subr.bf16.mxu1 %v2791_v55 }
  0xb2   : > { %2375 = vmatpush3.bf16.msra.mxu1 %v2791_v55 }
  0xb3   : > { %2376 = vmatprep.subr.bf16.mxu1 %v2792_v56 }
  0xb6   : > { %2377 = vmatpush3.bf16.msra.mxu1 %v2792_v56 }
  0xb7   : > { %2378 = vmatprep.subr.bf16.mxu1 %v2793_v57 }
  0xba   : > { %2379 = vmatpush3.bf16.msra.mxu1 %v2793_v57 }
  0xbd   : > { %2381 = vmatmul.mubr.bf16.vlgmr.msra.gmra.mrb[4].mxu1 %v3523_v13 }
  0xbe   : > { %2384 = vmatprep.mubr.bf16.mxu1 %v3545_v19 }
  0xc5   : > { %2385 = vmatmul.mubr.bf16.gmra.mrb[8].mxu1 %v2570_v27 }
  0xc6   : > { %2388 = vmatprep.mubr.bf16.mxu1 %v2574_v33  ;;  %v3656_v33 = vld [vmem:[%s4527_s2] ss:$0 sm:$0xff] }
  0xcd   : > { %2389 = vmatmul.mubr.bf16.gmra.mrb[12].mxu1 %v2578_v40 }
  0xce   : > { %2392 = vmatprep.mubr.bf16.mxu1 %v2582_v46 }
  0xd5   : > { %2393 = vmatmul.mubr.bf16.gmra.mrb[16].mxu1 %v2586_v49 }
  0xd6   : > { %2396 = vmatprep.mubr.bf16.mxu1 %v3488_v3 }
  0xdd   : > { %2397 = vmatmul.mubr.bf16.gmra.mrb[20].mxu1 %v3505_v8 }
  0xde   : > { %2400 = vmatprep.mubr.bf16.mxu1 %v3528_v14 }
  0xe5   : > { %2401 = vmatmul.mubr.bf16.gmra.mrb[24].mxu1 %v3550_v20 }
  0xe6   : > { %2404 = vmatprep.mubr.bf16.mxu1 %v3581_v29 }
  0xed   : > { %2405 = vmatmul.mubr.bf16.gmra.mrb[28].mxu1 %v2576_v35 }
  0xee   : > { %2408 = vmatprep.mubr.bf16.mxu1 %v2580_v43 }
  0xf5   : > { %2409 = vmatmul.mubr.bf16.gmra.mrb[32].mxu1 %v2584_v47 }
  0xf6   : > { %1135 = vmatprep.mubr.f32.mxu1 %v3565_v25 }
 0x170   : > { %v2125_v58 = vpop.f32.mrb[0].mxu1 }
 0x171   : > { %v2126_v59 = vpop.f32.mrb[1].mxu1 }
 0x172   : > { %v2127_v60 = vadd.f32 %v2126_v59, %v2125_v58 }
 0x174   : > { %372 = vst [vmem:[%s3648_s8] sm:$0xff] %v2127_v60 }
 0x190   : > { %v2382_v61 = vpop.f32.mrb[4].mxu1 }
 0x191   : > { %v494_v62 = vpop.f32.mrb[5].mxu1  ;;  %v503_v46 = vadd.f32 %v2382_v61, %v3656_v33 }
 0x192   : > { %v2383_v63 = vpop.f32.mrb[6].mxu1  ;;  %v495_v48 = vadd.f32 %v3656_v33, %v494_v62 }
 0x193   : > { %v497_v3 = vpop.f32.mrb[7].mxu1  ;;  %v506_v49 = vadd.f32 %v2383_v63, %v3656_v33  ;;  %2818 = vtanh.f32 %v503_v46 }
 0x194   : > { %v498_v51 = vadd.f32 %v3656_v33, %v497_v3  ;;  %2820 = vtanh.f32 %v495_v48 }
 0x195   : > { %2822 = vtanh.f32 %v506_v49 }
 0x196   : > { %2824 = vtanh.f32 %v498_v51 }
 0x198   : > { %v2386_v7 = vpop.f32.mrb[8].mxu1 }
 0x199   : > { %v510_v8 = vpop.f32.mrb[9].mxu1  ;;  %v519_v57 = vadd.f32 %v2386_v7, %v3656_v33 }
 0x19a   : > { %v2387_v13 = vpop.f32.mrb[10].mxu1  ;;  %v511_v60 = vadd.f32 %v3656_v33, %v510_v8 }
 0x19b   : > { %v513_v14 = vpop.f32.mrb[11].mxu1  ;;  %v522_v62 = vadd.f32 %v2387_v13, %v3656_v33 }
 0x19c   : > { %v514_v63 = vadd.f32 %v3656_v33, %v513_v14 }
 0x19d   : > { %v2819_v46 = vpop.eup %2818 }
 0x19e   : > { %v2821_v49 = vpop.eup %2820 }
 0x1a0   : > { %v2390_v19 = vpop.f32.mrb[12].mxu1 }
 0x1a1   : > { %v526_v20 = vpop.f32.mrb[13].mxu1  ;;  %v535_v13 = vadd.f32 %v2390_v19, %v3656_v33 }
 0x1a2   : > { %v3651_v27 = vpop.f32.mrb[14].mxu1 }
 0x1a3   : > { %v529_v29 = vpop.f32.mrb[15].mxu1 }
 0x1a8   : > { %v3658_v35 = vpop.f32.mrb[16].mxu1 }
 0x1a9   : > { %v3660_v40 = vpop.f32.mrb[17].mxu1 }
 0x1aa   : > { %v3662_v43 = vpop.f32.mrb[18].mxu1 }
 0x1ab   : > { %v3665_v47 = vpop.f32.mrb[19].mxu1 }
 0x1b0   : > { %v2398_v52 = vpop.f32.mrb[20].mxu1 }
 0x1b1   : > { %v567_v53 = vadd.f32 %v2398_v52, %v3656_v33  ;;  %v558_v54 = vpop.f32.mrb[21].mxu1  ;;  %v2823_v52 = vpop.eup %2822 }
 0x1b2   : > { %v559_v55 = vadd.f32 %v3656_v33, %v558_v54  ;;  %v2399_v56 = vpop.f32.mrb[22].mxu1  ;;  %v2825_v54 = vpop.eup %2824 }
 0x1b3   : > { %2826 = vtanh.f32 %v567_v53  ;;  %v570_v58 = vadd.f32 %v2399_v56, %v3656_v33  ;;  %v561_v59 = vpop.f32.mrb[23].mxu1 }
 0x1b4   : > { %2828 = vtanh.f32 %v559_v55  ;;  %v562_v61 = vadd.f32 %v3656_v33, %v561_v59  ;;  %v527_v55 = vadd.f32 %v3656_v33, %v526_v20  ;;  %v530_v59 = vadd.f32 %v3656_v33, %v529_v29 }
 0x1b5   : > { %2830 = vtanh.f32 %v570_v58 }
 0x1b6   : > { %2832 = vtanh.f32 %v562_v61 }
 0x1b7   : > { %2834 = vtanh.f32 %v519_v57 }
 0x1b8   : > { %2836 = vtanh.f32 %v511_v60  ;;  %v2402_v3 = vpop.f32.mrb[24].mxu1 }
 0x1b9   : > { %2838 = vtanh.f32 %v522_v62  ;;  %v583_v7 = vadd.f32 %v2402_v3, %v3656_v33  ;;  %v574_v48 = vpop.f32.mrb[25].mxu1  ;;  %v3686_v62 = vadd.f32 %v2821_v49, %v3484_v2  ;;  %v538_v2 = vadd.f32 %v3651_v27, %v3656_v33 }
 0x1ba   : > { %2840 = vtanh.f32 %v514_v63  ;;  %v575_v8 = vadd.f32 %v3656_v33, %v574_v48  ;;  %v2403_v51 = vpop.f32.mrb[26].mxu1  ;;  %v3689_v63 = vadd.f32 %v2825_v54, %v3491_v4  ;;  %v543_v54 = vadd.f32 %v3656_v33, %v3660_v40 }
 0x1bb   : > { %2842 = vtanh.f32 %v583_v7  ;;  %v586_v14 = vadd.f32 %v2403_v51, %v3656_v33  ;;  %v577_v53 = vpop.f32.mrb[27].mxu1  ;;  %v3733_v40 = vadd.f32 %v2819_v46, %v3508_v9 }
 0x1bc   : > { %2844 = vtanh.f32 %v575_v8  ;;  %v578_v56 = vadd.f32 %v3656_v33, %v577_v53 }
 0x1bd   : > { %v2827_v57 = vpop.eup %2826  ;;  %2846 = vtanh.f32 %v586_v14 }
 0x1be   : > { %v2829_v58 = vpop.eup %2828  ;;  %2848 = vtanh.f32 %v578_v56  ;;  %v3715_v53 = vadd.f32 %v2827_v57, %v3494_v5  ;;  %v546_v57 = vadd.f32 %v3656_v33, %v3665_v47 }
 0x1bf   : > { %v2831_v60 = vpop.eup %2830  ;;  %2850 = vtanh.f32 %v535_v13  ;;  %v3695_v48 = vadd.f32 %v2829_v58, %v3478_v0  ;;  %v3707_v13 = vadd.f32 %v2823_v52, %v3511_v10  ;;  %v3722_v52 = vpack.c.bf16 %v3689_v63, %v3686_v62 }
 0x1c0   : > { %v2833_v61 = vpop.eup %2832  ;;  %2852 = vtanh.f32 %v527_v55  ;;  %v2406_v19 = vpop.f32.mrb[28].mxu1  ;;  %v3701_v8 = vadd.f32 %v2831_v60, %v3497_v6 }
 0x1c1   : > { %v3691_v20 = vpop.eup %2834  ;;  %v599_v3 = vadd.f32 %v2406_v19, %v3656_v33  ;;  %v590_v7 = vpop.f32.mrb[29].mxu1  ;;  %v3698_v29 = vadd.f32 %v2833_v61, %v3481_v1  ;;  %2854 = vtanh.f32 %v530_v59  ;;  %v3738_v61 = vpack.c.bf16 %v3707_v13, %v3733_v40 }
 0x1c2   : > { %v2837_v51 = vpop.eup %2836  ;;  %v591_v4 = vadd.f32 %v3656_v33, %v590_v7  ;;  %v2407_v49 = vpop.f32.mrb[30].mxu1  ;;  %v3727_v56 = vpack.c.bf16 %v3701_v8, %v3715_v53 }
 0x1c3   : > { %v2839_v14 = vpop.eup %2838  ;;  %2856 = vtanh.f32 %v599_v3  ;;  %v602_v0 = vadd.f32 %v2407_v49, %v3656_v33  ;;  %v593_v1 = vpop.f32.mrb[31].mxu1  ;;  %v3712_v6 = vpack.c.bf16 %v3698_v29, %v3695_v48  ;;  %v554_v49 = vadd.f32 %v3662_v43, %v3656_v33 }
 0x1c4   : > { %v2841_v27 = vpop.eup %2840  ;;  %2858 = vtanh.f32 %v591_v4  ;;  %v594_v10 = vadd.f32 %v3656_v33, %v593_v1  ;;  %v3758_v1 = vadd.f32 %v2837_v51, %v3531_v15  ;;  %v3774_v15 = vadd.f32 %v2839_v14, %v3556_v22 }
 0x1c5   : > { %v2843_v55 = vpop.eup %2842  ;;  %2860 = vtanh.f32 %v602_v0  ;;  %2589 = vmatprep.subr.bf16.mxu0 %v3712_v6  ;;  %v3741_v19 = vadd.f32 %v2841_v27, %v3534_v16 }
 0x1c6   : > { %v2845_v5 = vpop.eup %2844  ;;  %2862 = vtanh.f32 %v594_v10  ;;  %2591 = vmatpush3.bf16.msra.mxu0 %v3722_v52  ;;  %v3766_v27 = vadd.f32 %v2843_v55, %v3537_v17 }
 0x1c7   : > { %v2847_v58 = vpop.eup %2846  ;;  %2864 = vtanh.f32 %v538_v2  ;;  %2593 = vmatprep.subr.bf16.mxu0 %v3727_v56  ;;  %v3745_v9 = vadd.f32 %v2845_v5, %v3514_v11  ;;  %v3771_v10 = vpack.c.bf16 %v3741_v19, %v3758_v1  ;;  %v551_v5 = vadd.f32 %v3658_v35, %v3656_v33 }
 0x1c8   : > { %v2849_v59 = vpop.eup %2848  ;;  %2866 = vtanh.f32 %v543_v54  ;;  %v2410_v60 = vpop.f32.mrb[32].mxu1  ;;  %v3751_v2 = vadd.f32 %v2847_v58, %v3540_v18 }
 0x1c9   : > { %v2851_v47 = vpop.eup %2850  ;;  %v615_v3 = vadd.f32 %v2410_v60, %v3656_v33  ;;  %v606_v7 = vpop.f32.mrb[33].mxu1  ;;  %v3748_v46 = vadd.f32 %v2849_v59, %v3518_v12  ;;  %2868 = vtanh.f32 %v546_v57  ;;  %v3786_v57 = vadd.f32 %v3691_v20, %v3553_v21 }
 0x1ca   : > { %v2853_v4 = vpop.eup %2852  ;;  %v607_v16 = vadd.f32 %v3656_v33, %v606_v7  ;;  %v2411_v0 = vpop.f32.mrb[34].mxu1  ;;  %2595 = vmatpush3.bf16.msra.mxu0 %v3738_v61  ;;  %v3781_v17 = vpack.c.bf16 %v3751_v2, %v3766_v27 }
 0x1cb   : > { %2870 = vtanh.f32 %v615_v3  ;;  %v618_v11 = vadd.f32 %v2411_v0, %v3656_v33  ;;  %v609_v12 = vpop.f32.mrb[35].mxu1  ;;  %v3763_v18 = vpack.c.bf16 %v3748_v46, %v3745_v9  ;;  %v2855_v43 = vpop.eup %2854  ;;  %v3791_v35 = vpack.c.bf16 %v3774_v15, %v3786_v57 }
 0x1cc   : > { %2872 = vtanh.f32 %v607_v16  ;;  %v610_v54 = vadd.f32 %v3656_v33, %v609_v12  ;;  %v3794_v14 = vadd.f32 %v2855_v43, %v3576_v28  ;;  %v3807_v3 = vadd.f32 %v2853_v4, %v3568_v26 }
 0x1cd   : > { %v2857_v51 = vpop.eup %2856  ;;  %2874 = vtanh.f32 %v618_v11  ;;  %2597 = vmatprep.subr.bf16.mxu0 %v3763_v18  ;;  %v3827_v16 = vadd.f32 %v2851_v47, %v3590_v32 }
 0x1ce   : > { %v2859_v55 = vpop.eup %2858  ;;  %2876 = vtanh.f32 %v610_v54  ;;  %2599 = vmatpush3.bf16.msra.mxu0 %v3771_v10  ;;  %v3814_v7 = vadd.f32 %v2857_v51, %v3584_v30 }
 0x1cf   : > { %v2861_v22 = vpop.eup %2860  ;;  %2878 = vtanh.f32 %v554_v49  ;;  %2601 = vmatprep.subr.bf16.mxu0 %v3781_v17  ;;  %v3797_v59 = vadd.f32 %v2859_v55, %v3559_v23  ;;  %v2794_v55 = vld [vmem:[#allocation5 + $0x40] sm:$0xff]  }
 0x1d0   : > { %v2863_v33 = vpop.eup %2862  ;;  %2880 = vtanh.f32 %v551_v5  ;;  %v3803_v20 = vadd.f32 %v2861_v22, %v3587_v31  ;;  %v2795_v22 = vld [vmem:[#allocation5 + $0x48] sm:$0xff]  }
 0x1d1   : > { %v2865_v58 = vpop.eup %2864  ;;  %v3800_v21 = vadd.f32 %v2863_v33, %v3562_v24  ;;  %v2606_v24 = vpack.c.bf16 %v3794_v14, %v3807_v3  ;;  %v2797_v33 = vld [vmem:[#allocation5 + $0x58] sm:$0xff]  }
 0x1d2   : > { %v2867_v60 = vpop.eup %2866  ;;  %2603 = vmatpush3.bf16.msra.mxu0 %v3791_v35  ;;  %v3819_v31 = vadd.f32 %v2865_v58, %v3595_v34  ;;  %v3824_v26 = vpack.c.bf16 %v3803_v20, %v3814_v7  ;;  %v2799_v58 = vld [vmem:[#allocation5 + $0x68] sm:$0xff]  }
 0x1d3   : > { %v3811_v28 = vpack.c.bf16 %v3800_v21, %v3797_v59  ;;  %v2869_v23 = vpop.eup %2868  ;;  %v3845_v47 = vadd.f32 %v2867_v60, %v3607_v38  ;;  %v2800_v60 = vld [vmem:[#allocation5 + $0x70] sm:$0xff]  }
 0x1d4   : > { %v2610_v34 = vpack.c.bf16 %v3819_v31, %v3827_v16  ;;  %v3833_v11 = vadd.f32 %v2869_v23, %v3610_v39  ;;  %v2801_v23 = vld [vmem:[#allocation5 + $0x78] sm:$0xff]  }
 0x1d5   : > { %v2871_v49 = vpop.eup %2870  ;;  %2605 = vmatprep.subr.bf16.mxu0 %v3811_v28 }
 0x1d6   : > { %v2873_v4 = vpop.eup %2872  ;;  %2607 = vmatpush3.bf16.msra.mxu0 %v2606_v24  ;;  %v3850_v39 = vadd.f32 %v2871_v49, %v3615_v41 }
 0x1d7   : > { %v2875_v30 = vpop.eup %2874  ;;  %2609 = vmatprep.subr.bf16.mxu0 %v3824_v26  ;;  %v3836_v43 = vadd.f32 %v2873_v4, %v3601_v36  ;;  %v2614_v36 = vpack.c.bf16 %v3833_v11, %v3845_v47 }
 0x1d8   : > { %v2877_v0 = vpop.eup %2876  ;;  %v3842_v32 = vadd.f32 %v2875_v30, %v3618_v42 }
 0x1d9   : > { %v2879_v12 = vpop.eup %2878  ;;  %v3839_v54 = vadd.f32 %v2877_v0, %v3604_v37 }
 0x1da   : > { %2611 = vmatpush3.bf16.msra.mxu0 %v2610_v34  ;;  %v2881_v51 = vpop.eup %2880  ;;  %v3855_v37 = vadd.f32 %v2879_v12, %v3626_v45  ;;  %v2616_v42 = vpack.c.bf16 %v3842_v32, %v3850_v39  ;;  %v2796_v45 = vld [vmem:[#allocation5 + $0x50] sm:$0xff]  }
 0x1db   : > { %v2612_v5 = vpack.c.bf16 %v3839_v54, %v3836_v43  ;;  %v3860_v38 = vadd.f32 %v2881_v51, %v3623_v44  ;;  %v2798_v44 = vld [vmem:[#allocation5 + $0x60] sm:$0xff]  }
 0x1dd   : > { %2613 = vmatprep.subr.bf16.mxu0 %v2612_v5  ;;  %v2618_v41 = vpack.c.bf16 %v3855_v37, %v3860_v38 }
 0x1de   : > { %2615 = vmatpush3.bf16.msra.mxu0 %v2614_v36 }
 0x1df   : > { %2617 = vmatprep.subr.bf16.mxu0 %v2616_v42 }
 0x1e2   : > { %2619 = vmatpush3.bf16.msra.mxu0 %v2618_v41 }
 0x1e3   : > { %2412 = vmatprep.subr.bf16.mxu0 %v2794_v55 }
 0x1e5   : > { %750 = vmatmul.mubr.f32.vlgmr.msra.gmra.mrb[0].mxu0 %v3635_v50 }
 0x1e6   : > { %2413 = vmatpush3.bf16.msra.mxu0 %v2794_v55  ;;  %2428 = vmatprep.mubr.bf16.mxu0 %v3722_v52 }
 0x1e7   : > { %2414 = vmatprep.subr.bf16.mxu0 %v2795_v22 }
 0x1ea   : > { %2415 = vmatpush3.bf16.msra.mxu0 %v2795_v22 }
 0x1eb   : > { %2416 = vmatprep.subr.bf16.mxu0 %v2796_v45 }
 0x1ee   : > { %2417 = vmatpush3.bf16.msra.mxu0 %v2796_v45 }
 0x1ef   : > { %2418 = vmatprep.subr.bf16.mxu0 %v2797_v33 }
 0x1f2   : > { %2419 = vmatpush3.bf16.msra.mxu0 %v2797_v33 }
 0x1f3   : > { %2420 = vmatprep.subr.bf16.mxu0 %v2798_v44 }
 0x1f6   : > { %2421 = vmatpush3.bf16.msra.mxu0 %v2798_v44 }
 0x1f7   : > { %2422 = vmatprep.subr.bf16.mxu0 %v2799_v58 }
 0x1fa   : > { %2423 = vmatpush3.bf16.msra.mxu0 %v2799_v58 }
 0x1fb   : > { %2424 = vmatprep.subr.bf16.mxu0 %v2800_v60 }
 0x1fe   : > { %2425 = vmatpush3.bf16.msra.mxu0 %v2800_v60 }
 0x1ff   : > { %2426 = vmatprep.subr.bf16.mxu0 %v2801_v23 }
 0x202   : > { %2427 = vmatpush3.bf16.msra.mxu0 %v2801_v23 }
 0x205   : > { %2429 = vmatmul.mubr.bf16.vlgmr.msra.gmra.mrb[4].mxu0 %v3738_v61 }
 0x206   : > { %2432 = vmatprep.mubr.bf16.mxu0 %v3771_v10 }
 0x20d   : > { %2433 = vmatmul.mubr.bf16.gmra.mrb[8].mxu0 %v3791_v35 }
 0x20e   : > { %2436 = vmatprep.mubr.bf16.mxu0 %v2606_v24 }
 0x215   : > { %2437 = vmatmul.mubr.bf16.gmra.mrb[12].mxu0 %v2610_v34 }
 0x216   : > { %2440 = vmatprep.mubr.bf16.mxu0 %v2614_v36 }
 0x21d   : > { %2441 = vmatmul.mubr.bf16.gmra.mrb[16].mxu0 %v2618_v41 }
 0x21e   : > { %2444 = vmatprep.mubr.bf16.mxu0 %v3712_v6 }
 0x225   : > { %2445 = vmatmul.mubr.bf16.gmra.mrb[20].mxu0 %v3727_v56 }
 0x226   : > { %2448 = vmatprep.mubr.bf16.mxu0 %v3763_v18 }
 0x22d   : > { %2449 = vmatmul.mubr.bf16.gmra.mrb[24].mxu0 %v3781_v17 }
 0x22e   : > { %2452 = vmatprep.mubr.bf16.mxu0 %v3811_v28 }
 0x235   : > { %2453 = vmatmul.mubr.bf16.gmra.mrb[28].mxu0 %v3824_v26 }
 0x236   : > { %2456 = vmatprep.mubr.bf16.mxu0 %v2612_v5 }
 0x23d   : > { %2457 = vmatmul.mubr.bf16.gmra.mrb[32].mxu0 %v2616_v42 }
 0x23e   : > { %1521 = vmatprep.mubr.f32.mxu0 %v3565_v25  ;;  %v3882_v25 = vld [vmem:[%s4527_s2 + $0x1] ss:$0 sm:$0xff] }
 0x2b8   : > { %v2184_v52 = vpop.f32.mrb[0].mxu0 }
 0x2b9   : > { %v2185_v61 = vpop.f32.mrb[1].mxu0 }
 0x2ba   : > { %v2186_v10 = vadd.f32 %v2185_v61, %v2184_v52 }
 0x2bc   : > { %2054 = vst [vmem:[%s3648_s8 + $0x8] sm:$0xff] %v2186_v10 }
 0x2d8   : > { %v2430_v35 = vpop.f32.mrb[4].mxu0 }
 0x2d9   : > { %v880_v6 = vpop.f32.mrb[5].mxu0  ;;  %v889_v5 = vadd.f32 %v2430_v35, %v3882_v25 }
 0x2da   : > { %v2431_v24 = vpop.f32.mrb[6].mxu0  ;;  %v881_v42 = vadd.f32 %v3882_v25, %v880_v6 }
 0x2db   : > { %v883_v56 = vpop.f32.mrb[7].mxu0  ;;  %v892_v55 = vadd.f32 %v2431_v24, %v3882_v25  ;;  %2882 = vtanh.f32 %v889_v5 }
 0x2dc   : > { %v884_v41 = vadd.f32 %v3882_v25, %v883_v56  ;;  %2884 = vtanh.f32 %v881_v42 }
 0x2dd   : > { %2886 = vtanh.f32 %v892_v55 }
 0x2de   : > { %2888 = vtanh.f32 %v884_v41 }
 0x2e0   : > { %v2434_v49 = vpop.f32.mrb[8].mxu0 }
 0x2e1   : > { %v896_v18 = vpop.f32.mrb[9].mxu0  ;;  %v905_v60 = vadd.f32 %v2434_v49, %v3882_v25 }
 0x2e2   : > { %v2435_v4 = vpop.f32.mrb[10].mxu0  ;;  %v897_v61 = vadd.f32 %v3882_v25, %v896_v18 }
 0x2e3   : > { %v899_v17 = vpop.f32.mrb[11].mxu0  ;;  %v908_v35 = vadd.f32 %v2435_v4, %v3882_v25 }
 0x2e4   : > { %v900_v6 = vadd.f32 %v3882_v25, %v899_v17 }
 0x2e5   : > { %v2883_v56 = vpop.eup %2882 }
 0x2e6   : > { %v2885_v42 = vpop.eup %2884 }
 0x2e7   : > { %v2887_v41 = vpop.eup %2886 }
 0x2e8   : > { %v2438_v30 = vpop.f32.mrb[12].mxu0 }
 0x2e9   : > { %v912_v28 = vpop.f32.mrb[13].mxu0  ;;  %v921_v4 = vadd.f32 %v2438_v30, %v3882_v25 }
 0x2ea   : > { %v3877_v0 = vpop.f32.mrb[14].mxu0 }
 0x2eb   : > { %v915_v26 = vpop.f32.mrb[15].mxu0 }
 0x2f0   : > { %v3884_v34 = vpop.f32.mrb[16].mxu0 }
 0x2f1   : > { %v3886_v12 = vpop.f32.mrb[17].mxu0 }
 0x2f2   : > { %v3888_v51 = vpop.f32.mrb[18].mxu0 }
 0x2f3   : > { %v3891_v36 = vpop.f32.mrb[19].mxu0 }
 0x2f8   : > { %v2446_v22 = vpop.f32.mrb[20].mxu0 }
 0x2f9   : > { %v953_v45 = vadd.f32 %v2446_v22, %v3882_v25  ;;  %v944_v33 = vpop.f32.mrb[21].mxu0 }
 0x2fa   : > { %v945_v44 = vadd.f32 %v3882_v25, %v944_v33  ;;  %v2447_v58 = vpop.f32.mrb[22].mxu0  ;;  %v913_v33 = vadd.f32 %v3882_v25, %v912_v28 }
 0x2fb   : > { %2890 = vtanh.f32 %v953_v45  ;;  %v956_v23 = vadd.f32 %v2447_v58, %v3882_v25  ;;  %v947_v52 = vpop.f32.mrb[23].mxu0  ;;  %v2889_v45 = vpop.eup %2888 }
 0x2fc   : > { %2892 = vtanh.f32 %v945_v44  ;;  %v948_v10 = vadd.f32 %v3882_v25, %v947_v52 }
 0x2fd   : > { %2894 = vtanh.f32 %v956_v23  ;;  %v916_v23 = vadd.f32 %v3882_v25, %v915_v26 }
 0x2fe   : > { %2896 = vtanh.f32 %v948_v10  ;;  %v3912_v10 = vadd.f32 %v2885_v42, %v3686_v62  ;;  %v924_v62 = vadd.f32 %v3877_v0, %v3882_v25 }
 0x2ff   : > { %2898 = vtanh.f32 %v905_v60 }
 0x300   : > { %2900 = vtanh.f32 %v897_v61  ;;  %v2450_v24 = vpop.f32.mrb[24].mxu0 }
 0x301   : > { %2902 = vtanh.f32 %v908_v35  ;;  %v969_v49 = vadd.f32 %v2450_v24, %v3882_v25  ;;  %v960_v5 = vpop.f32.mrb[25].mxu0  ;;  %v3915_v35 = vadd.f32 %v2889_v45, %v3689_v63 }
 0x302   : > { %2904 = vtanh.f32 %v900_v6  ;;  %v961_v18 = vadd.f32 %v3882_v25, %v960_v5  ;;  %v2451_v55 = vpop.f32.mrb[26].mxu0 }
 0x303   : > { %2906 = vtanh.f32 %v969_v49  ;;  %v972_v17 = vadd.f32 %v2451_v55, %v3882_v25  ;;  %v963_v22 = vpop.f32.mrb[27].mxu0  ;;  %v3933_v55 = vadd.f32 %v2887_v41, %v3707_v13  ;;  %v3948_v41 = vpack.c.bf16 %v3915_v35, %v3912_v10 }
 0x304   : > { %2908 = vtanh.f32 %v961_v18  ;;  %v964_v44 = vadd.f32 %v3882_v25, %v963_v22  ;;  %v929_v22 = vadd.f32 %v3882_v25, %v3886_v12  ;;  %v3959_v12 = vadd.f32 %v2883_v56, %v3733_v40 }
 0x305   : > { %v2891_v58 = vpop.eup %2890  ;;  %2910 = vtanh.f32 %v972_v17 }
 0x306   : > { %v2893_v60 = vpop.eup %2892  ;;  %2912 = vtanh.f32 %v964_v44  ;;  %v3941_v17 = vadd.f32 %v2891_v58, %v3715_v53  ;;  %v932_v44 = vadd.f32 %v3882_v25, %v3891_v36 }
 0x307   : > { %v2895_v52 = vpop.eup %2894  ;;  %2914 = vtanh.f32 %v921_v4  ;;  %v3921_v49 = vadd.f32 %v2893_v60, %v3695_v48 }
 0x308   : > { %v2897_v61 = vpop.eup %2896  ;;  %2916 = vtanh.f32 %v913_v33  ;;  %v2454_v30 = vpop.f32.mrb[28].mxu0  ;;  %v3927_v5 = vadd.f32 %v2895_v52, %v3701_v8  ;;  %v3964_v52 = vpack.c.bf16 %v3933_v55, %v3959_v12 }
 0x309   : > { %v3917_v28 = vpop.eup %2898  ;;  %v985_v6 = vadd.f32 %v2454_v30, %v3882_v25  ;;  %v976_v24 = vpop.f32.mrb[29].mxu0  ;;  %v3924_v26 = vadd.f32 %v2897_v61, %v3698_v29  ;;  %2918 = vtanh.f32 %v916_v23 }
 0x30a   : > { %v2901_v18 = vpop.eup %2900  ;;  %v977_v63 = vadd.f32 %v3882_v25, %v976_v24  ;;  %v2455_v42 = vpop.f32.mrb[30].mxu0  ;;  %v3953_v33 = vpack.c.bf16 %v3927_v5, %v3941_v17 }
 0x30b   : > { %v2903_v4 = vpop.eup %2902  ;;  %2920 = vtanh.f32 %v985_v6  ;;  %v988_v48 = vadd.f32 %v2455_v42, %v3882_v25  ;;  %v979_v29 = vpop.f32.mrb[31].mxu0  ;;  %v3938_v8 = vpack.c.bf16 %v3924_v26, %v3921_v49 }
 0x30c   : > { %v2905_v0 = vpop.eup %2904  ;;  %2922 = vtanh.f32 %v977_v63  ;;  %v980_v13 = vadd.f32 %v3882_v25, %v979_v29  ;;  %v940_v63 = vadd.f32 %v3888_v51, %v3882_v25 }
 0x30d   : > { %v2907_v45 = vpop.eup %2906  ;;  %2924 = vtanh.f32 %v988_v48  ;;  %2621 = vmatprep.subr.bf16.mxu1 %v3938_v8  ;;  %v3967_v61 = vadd.f32 %v2905_v0, %v3741_v19  ;;  %v3984_v48 = vadd.f32 %v2901_v18, %v3758_v1  ;;  %v4000_v1 = vadd.f32 %v2903_v4, %v3774_v15 }
 0x30e   : > { %v2909_v53 = vpop.eup %2908  ;;  %2926 = vtanh.f32 %v980_v13  ;;  %2623 = vmatpush3.bf16.msra.mxu1 %v3948_v41  ;;  %v3992_v29 = vadd.f32 %v2907_v45, %v3766_v27  ;;  %v937_v13 = vadd.f32 %v3884_v34, %v3882_v25 }
 0x30f   : > { %v2911_v58 = vpop.eup %2910  ;;  %2928 = vtanh.f32 %v924_v62  ;;  %2625 = vmatprep.subr.bf16.mxu1 %v3953_v33  ;;  %v3971_v40 = vadd.f32 %v2909_v53, %v3745_v9  ;;  %v4012_v53 = vadd.f32 %v3917_v28, %v3786_v57 }
 0x310   : > { %v2913_v60 = vpop.eup %2912  ;;  %2930 = vtanh.f32 %v929_v22  ;;  %v2458_v23 = vpop.f32.mrb[32].mxu0  ;;  %v3977_v24 = vadd.f32 %v2911_v58, %v3751_v2  ;;  %v3997_v22 = vpack.c.bf16 %v3967_v61, %v3984_v48 }
 0x311   : > { %v2915_v36 = vpop.eup %2914  ;;  %v1001_v30 = vadd.f32 %v2458_v23, %v3882_v25  ;;  %v992_v6 = vpop.f32.mrb[33].mxu0  ;;  %v3974_v56 = vadd.f32 %v2913_v60, %v3748_v46  ;;  %2932 = vtanh.f32 %v932_v44  ;;  %v4017_v34 = vpack.c.bf16 %v4000_v1, %v4012_v53 }
 0x312   : > { %v2917_v62 = vpop.eup %2916  ;;  %v993_v19 = vadd.f32 %v3882_v25, %v992_v6  ;;  %v2459_v42 = vpop.f32.mrb[34].mxu0  ;;  %2627 = vmatpush3.bf16.msra.mxu1 %v3964_v52  ;;  %v4007_v27 = vpack.c.bf16 %v3977_v24, %v3992_v29 }
 0x313   : > { %2934 = vtanh.f32 %v1001_v30  ;;  %v1004_v9 = vadd.f32 %v2459_v42, %v3882_v25  ;;  %v995_v46 = vpop.f32.mrb[35].mxu0  ;;  %v3989_v2 = vpack.c.bf16 %v3974_v56, %v3971_v40  ;;  %v2919_v51 = vpop.eup %2918  ;;  %v4033_v23 = vadd.f32 %v2917_v62, %v3807_v3 }
 0x314   : > { %2936 = vtanh.f32 %v993_v19  ;;  %v996_v0 = vadd.f32 %v3882_v25, %v995_v46  ;;  %v4020_v4 = vadd.f32 %v2919_v51, %v3794_v14 }
 0x315   : > { %v2921_v18 = vpop.eup %2920  ;;  %2938 = vtanh.f32 %v1004_v9  ;;  %2629 = vmatprep.subr.bf16.mxu1 %v3989_v2 }
 0x316   : > { %v2923_v45 = vpop.eup %2922  ;;  %2940 = vtanh.f32 %v996_v0  ;;  %2631 = vmatpush3.bf16.msra.mxu1 %v3997_v22  ;;  %v4040_v30 = vadd.f32 %v2921_v18, %v3814_v7 }
 0x317   : > { %v2925_v15 = vpop.eup %2924  ;;  %2942 = vtanh.f32 %v940_v63  ;;  %2633 = vmatprep.subr.bf16.mxu1 %v4007_v27  ;;  %v4023_v58 = vadd.f32 %v2923_v45, %v3797_v59  ;;  %v4053_v63 = vadd.f32 %v2915_v36, %v3827_v16  ;;  %v2803_v45 = vld [vmem:[#allocation5 + $0x88] sm:$0xff]  }
 0x318   : > { %v2927_v25 = vpop.eup %2926  ;;  %2944 = vtanh.f32 %v937_v13  ;;  %v4029_v28 = vadd.f32 %v2925_v15, %v3803_v20  ;;  %v2802_v13 = vld [vmem:[#allocation5 + $0x80] sm:$0xff]   ;;  %v2805_v15 = vld [vmem:[#allocation5 + $0x98] sm:$0xff]  }
 0x319   : > { %v2929_v44 = vpop.eup %2928  ;;  %v4026_v57 = vadd.f32 %v2927_v25, %v3800_v21  ;;  %v2638_v21 = vpack.c.bf16 %v4020_v4, %v4033_v23  ;;  %v2807_v25 = vld [vmem:[#allocation5 + $0xa8] sm:$0xff]  }
 0x31a   : > { %v2931_v60 = vpop.eup %2930  ;;  %2635 = vmatpush3.bf16.msra.mxu1 %v4017_v34  ;;  %v4045_v20 = vadd.f32 %v2929_v44, %v3819_v31  ;;  %v4050_v3 = vpack.c.bf16 %v4029_v28, %v4040_v30  ;;  %v2808_v44 = vld [vmem:[#allocation5 + $0xb0] sm:$0xff]  }
 0x31b   : > { %v4037_v14 = vpack.c.bf16 %v4026_v57, %v4023_v58  ;;  %v2933_v59 = vpop.eup %2932  ;;  %v4071_v36 = vadd.f32 %v2931_v60, %v3845_v47 }
 0x31c   : > { %v2642_v31 = vpack.c.bf16 %v4045_v20, %v4053_v63  ;;  %v4059_v42 = vadd.f32 %v2933_v59, %v3833_v11 }
 0x31d   : > { %v2935_v6 = vpop.eup %2934  ;;  %2637 = vmatprep.subr.bf16.mxu1 %v4037_v14 }
 0x31e   : > { %v2937_v62 = vpop.eup %2936  ;;  %2639 = vmatpush3.bf16.msra.mxu1 %v2638_v21  ;;  %v4076_v11 = vadd.f32 %v2935_v6, %v3850_v39 }
 0x31f   : > { %v2939_v7 = vpop.eup %2938  ;;  %2641 = vmatprep.subr.bf16.mxu1 %v4050_v3  ;;  %v4062_v46 = vadd.f32 %v2937_v62, %v3836_v43  ;;  %v2646_v43 = vpack.c.bf16 %v4059_v42, %v4071_v36 }
 0x320   : > { %v2941_v19 = vpop.eup %2940  ;;  %v4068_v16 = vadd.f32 %v2939_v7, %v3842_v32 }
 0x321   : > { %v2943_v9 = vpop.eup %2942  ;;  %v4065_v51 = vadd.f32 %v2941_v19, %v3839_v54  ;;  %v4108_v19 = vld [vmem:[%s4527_s2 + $0x2] ss:$0 sm:$0xff] }
 0x322   : > { %2643 = vmatpush3.bf16.msra.mxu1 %v2642_v31  ;;  %v2945_v0 = vpop.eup %2944  ;;  %v4081_v54 = vadd.f32 %v2943_v9, %v3855_v37  ;;  %v2648_v32 = vpack.c.bf16 %v4068_v16, %v4076_v11  ;;  %v2804_v37 = vld [vmem:[#allocation5 + $0x90] sm:$0xff]  }
 0x323   : > { %v2644_v18 = vpack.c.bf16 %v4065_v51, %v4062_v46  ;;  %v4086_v47 = vadd.f32 %v2945_v0, %v3860_v38  ;;  %v2806_v38 = vld [vmem:[#allocation5 + $0xa0] sm:$0xff]  }
 0x325   : > { %2645 = vmatprep.subr.bf16.mxu1 %v2644_v18  ;;  %v2650_v39 = vpack.c.bf16 %v4081_v54, %v4086_v47 }
 0x326   : > { %2647 = vmatpush3.bf16.msra.mxu1 %v2646_v43 }
 0x327   : > { %2649 = vmatprep.subr.bf16.mxu1 %v2648_v32 }
 0x32a   : > { %2651 = vmatpush3.bf16.msra.mxu1 %v2650_v39 }
 0x32b   : > { %2460 = vmatprep.subr.bf16.mxu1 %v2802_v13 }
 0x32d   : > { %1136 = vmatmul.mubr.f32.vlgmr.msra.gmra.mrb[2].mxu1 %v3635_v50  ;;  %v2809_v50 = vld [vmem:[#allocation5 + $0xb8] sm:$0xff]  }
 0x32e   : > { %2461 = vmatpush3.bf16.msra.mxu1 %v2802_v13  ;;  %2476 = vmatprep.mubr.bf16.mxu1 %v3948_v41  ;;  %v3074_v41 = vld [vmem:[%s3471_s7 + $0x8] sm:$0xff] }
 0x32f   : > { %2462 = vmatprep.subr.bf16.mxu1 %v2803_v45 }
 0x332   : > { %2463 = vmatpush3.bf16.msra.mxu1 %v2803_v45 }
 0x333   : > { %2464 = vmatprep.subr.bf16.mxu1 %v2804_v37 }
 0x336   : > { %2465 = vmatpush3.bf16.msra.mxu1 %v2804_v37 }
 0x337   : > { %2466 = vmatprep.subr.bf16.mxu1 %v2805_v15 }
 0x33a   : > { %2467 = vmatpush3.bf16.msra.mxu1 %v2805_v15 }
 0x33b   : > { %2468 = vmatprep.subr.bf16.mxu1 %v2806_v38 }
 0x33e   : > { %2469 = vmatpush3.bf16.msra.mxu1 %v2806_v38 }
 0x33f   : > { %2470 = vmatprep.subr.bf16.mxu1 %v2807_v25 }
 0x342   : > { %2471 = vmatpush3.bf16.msra.mxu1 %v2807_v25 }
 0x343   : > { %2472 = vmatprep.subr.bf16.mxu1 %v2808_v44 }
 0x346   : > { %2473 = vmatpush3.bf16.msra.mxu1 %v2808_v44 }
 0x347   : > { %2474 = vmatprep.subr.bf16.mxu1 %v2809_v50 }
 0x34a   : > { %2475 = vmatpush3.bf16.msra.mxu1 %v2809_v50 }
 0x34d   : > { %2477 = vmatmul.mubr.bf16.vlgmr.msra.gmra.mrb[36].mxu1 %v3964_v52 }
 0x34e   : > { %2480 = vmatprep.mubr.bf16.mxu1 %v3997_v22 }
 0x355   : > { %2481 = vmatmul.mubr.bf16.gmra.mrb[40].mxu1 %v4017_v34 }
 0x356   : > { %2484 = vmatprep.mubr.bf16.mxu1 %v2638_v21 }
 0x35d   : > { %2485 = vmatmul.mubr.bf16.gmra.mrb[44].mxu1 %v2642_v31 }
 0x35e   : > { %2488 = vmatprep.mubr.bf16.mxu1 %v2646_v43 }
 0x365   : > { %2489 = vmatmul.mubr.bf16.gmra.mrb[48].mxu1 %v2650_v39 }
 0x366   : > { %2492 = vmatprep.mubr.bf16.mxu1 %v3938_v8 }
 0x36d   : > { %2493 = vmatmul.mubr.bf16.gmra.mrb[52].mxu1 %v3953_v33 }
 0x36e   : > { %2496 = vmatprep.mubr.bf16.mxu1 %v3989_v2 }
 0x375   : > { %2497 = vmatmul.mubr.bf16.gmra.mrb[56].mxu1 %v4007_v27 }
 0x376   : > { %2500 = vmatprep.mubr.bf16.mxu1 %v4037_v14 }
 0x37d   : > { %2501 = vmatmul.mubr.bf16.gmra.mrb[60].mxu1 %v4050_v3 }
 0x37e   : > { %2504 = vmatprep.mubr.bf16.mxu1 %v2644_v18 }
 0x385   : > { %2505 = vmatmul.mubr.bf16.gmra.mrb[64].mxu1 %v2648_v32 }
 0x386   : > { %1907 = vmatprep.mubr.f32.mxu1 %v3074_v41 }
 0x400   : > { %v2243_v52 = vpop.f32.mrb[2].mxu1 }
 0x401   : > { %v2244_v22 = vpop.f32.mrb[3].mxu1 }
 0x402   : > { %v2245_v34 = vadd.f32 %v2244_v22, %v2243_v52 }
 0x404   : > { %2065 = vst [vmem:[%s3648_s8 + $0x10] sm:$0xff] %v2245_v34 }
 0x420   : > { %v2478_v60 = vpop.f32.mrb[36].mxu1 }
 0x421   : > { %v1266_v8 = vpop.f32.mrb[37].mxu1  ;;  %v1275_v18 = vadd.f32 %v2478_v60, %v4108_v19 }
 0x422   : > { %v2479_v59 = vpop.f32.mrb[38].mxu1  ;;  %v1267_v32 = vadd.f32 %v4108_v19, %v1266_v8 }
 0x423   : > { %v1269_v33 = vpop.f32.mrb[39].mxu1  ;;  %v1278_v13 = vadd.f32 %v2479_v59, %v4108_v19  ;;  %2946 = vtanh.f32 %v1275_v18 }
 0x424   : > { %v1270_v39 = vadd.f32 %v4108_v19, %v1269_v33  ;;  %2948 = vtanh.f32 %v1267_v32 }
 0x425   : > { %2950 = vtanh.f32 %v1278_v13 }
 0x426   : > { %2952 = vtanh.f32 %v1270_v39 }
 0x428   : > { %v2482_v21 = vpop.f32.mrb[40].mxu1 }
 0x429   : > { %v1282_v2 = vpop.f32.mrb[41].mxu1  ;;  %v1291_v44 = vadd.f32 %v2482_v21, %v4108_v19 }
 0x42a   : > { %v2483_v6 = vpop.f32.mrb[42].mxu1  ;;  %v1283_v52 = vadd.f32 %v4108_v19, %v1282_v2 }
 0x42b   : > { %v1285_v27 = vpop.f32.mrb[43].mxu1  ;;  %v1294_v34 = vadd.f32 %v2483_v6, %v4108_v19 }
 0x42c   : > { %v1286_v60 = vadd.f32 %v4108_v19, %v1285_v27 }
 0x42d   : > { %v2947_v59 = vpop.eup %2946 }
 0x42e   : > { %v2949_v18 = vpop.eup %2948 }
 0x42f   : > { %v2951_v13 = vpop.eup %2950 }
 0x430   : > { %v2486_v62 = vpop.f32.mrb[44].mxu1 }
 0x431   : > { %v1298_v14 = vpop.f32.mrb[45].mxu1  ;;  %v1307_v6 = vadd.f32 %v2486_v62, %v4108_v19 }
 0x432   : > { %v4103_v7 = vpop.f32.mrb[46].mxu1 }
 0x433   : > { %v1301_v3 = vpop.f32.mrb[47].mxu1 }
 0x438   : > { %v4110_v31 = vpop.f32.mrb[48].mxu1 }
 0x439   : > { %v4112_v9 = vpop.f32.mrb[49].mxu1 }
 0x43a   : > { %v4114_v0 = vpop.f32.mrb[50].mxu1 }
 0x43b   : > { %v4117_v43 = vpop.f32.mrb[51].mxu1 }
 0x440   : > { %v2494_v45 = vpop.f32.mrb[52].mxu1 }
 0x441   : > { %v1339_v37 = vadd.f32 %v2494_v45, %v4108_v19  ;;  %v1330_v15 = vpop.f32.mrb[53].mxu1  ;;  %v2953_v45 = vpop.eup %2952 }
 0x442   : > { %v1331_v38 = vadd.f32 %v4108_v19, %v1330_v15  ;;  %v2495_v25 = vpop.f32.mrb[54].mxu1 }
 0x443   : > { %2954 = vtanh.f32 %v1339_v37  ;;  %v1342_v50 = vadd.f32 %v2495_v25, %v4108_v19  ;;  %v1333_v41 = vpop.f32.mrb[55].mxu1  ;;  %v1299_v37 = vadd.f32 %v4108_v19, %v1298_v14 }
 0x444   : > { %2956 = vtanh.f32 %v1331_v38  ;;  %v1334_v22 = vadd.f32 %v4108_v19, %v1333_v41 }
 0x445   : > { %2958 = vtanh.f32 %v1342_v50 }
 0x446   : > { %2960 = vtanh.f32 %v1334_v22  ;;  %v4141_v22 = vadd.f32 %v2953_v45, %v3915_v35 }
 0x447   : > { %2962 = vtanh.f32 %v1291_v44  ;;  %v1302_v44 = vadd.f32 %v4108_v19, %v1301_v3 }
 0x448   : > { %2964 = vtanh.f32 %v1283_v52  ;;  %v2498_v8 = vpop.f32.mrb[56].mxu1  ;;  %v4138_v52 = vadd.f32 %v2949_v18, %v3912_v10  ;;  %v1310_v10 = vadd.f32 %v4103_v7, %v4108_v19 }
 0x449   : > { %2966 = vtanh.f32 %v1294_v34  ;;  %v1355_v33 = vadd.f32 %v2498_v8, %v4108_v19  ;;  %v1346_v21 = vpop.f32.mrb[57].mxu1 }
 0x44a   : > { %2968 = vtanh.f32 %v1286_v60  ;;  %v1347_v2 = vadd.f32 %v4108_v19, %v1346_v21  ;;  %v2499_v32 = vpop.f32.mrb[58].mxu1 }
 0x44b   : > { %2970 = vtanh.f32 %v1355_v33  ;;  %v1358_v27 = vadd.f32 %v2499_v32, %v4108_v19  ;;  %v1349_v39 = vpop.f32.mrb[59].mxu1 }
 0x44c   : > { %2972 = vtanh.f32 %v1347_v2  ;;  %v1350_v15 = vadd.f32 %v4108_v19, %v1349_v39  ;;  %v4159_v2 = vadd.f32 %v2951_v13, %v3933_v55  ;;  %v4174_v13 = vpack.c.bf16 %v4141_v22, %v4138_v52 }
 0x44d   : > { %v2955_v38 = vpop.eup %2954  ;;  %2974 = vtanh.f32 %v1358_v27  ;;  %v1315_v27 = vadd.f32 %v4108_v19, %v4112_v9  ;;  %v4185_v9 = vadd.f32 %v2947_v59, %v3959_v12 }
 0x44e   : > { %v2957_v25 = vpop.eup %2956  ;;  %2976 = vtanh.f32 %v1350_v15 }
 0x44f   : > { %v2959_v50 = vpop.eup %2958  ;;  %2978 = vtanh.f32 %v1307_v6  ;;  %v4147_v8 = vadd.f32 %v2957_v25, %v3921_v49  ;;  %v4167_v6 = vadd.f32 %v2955_v38, %v3941_v17 }
 0x450   : > { %v2961_v41 = vpop.eup %2960  ;;  %2980 = vtanh.f32 %v1299_v37  ;;  %v2502_v62 = vpop.f32.mrb[60].mxu1  ;;  %v4153_v33 = vadd.f32 %v2959_v50, %v3927_v5  ;;  %v1318_v37 = vadd.f32 %v4108_v19, %v4117_v43 }
 0x451   : > { %v4143_v14 = vpop.eup %2962  ;;  %v1371_v34 = vadd.f32 %v2502_v62, %v4108_v19  ;;  %v1362_v60 = vpop.f32.mrb[61].mxu1  ;;  %v4150_v3 = vadd.f32 %v2961_v41, %v3924_v26  ;;  %2982 = vtanh.f32 %v1302_v44  ;;  %v4190_v44 = vpack.c.bf16 %v4159_v2, %v4185_v9 }
 0x452   : > { %v2965_v21 = vpop.eup %2964  ;;  %v1363_v35 = vadd.f32 %v4108_v19, %v1362_v60  ;;  %v2503_v18 = vpop.f32.mrb[62].mxu1  ;;  %v4179_v45 = vpack.c.bf16 %v4153_v33, %v4167_v6 }
 0x453   : > { %v2967_v32 = vpop.eup %2966  ;;  %2984 = vtanh.f32 %v1371_v34  ;;  %v1374_v49 = vadd.f32 %v2503_v18, %v4108_v19  ;;  %v1365_v26 = vpop.f32.mrb[63].mxu1  ;;  %v4164_v5 = vpack.c.bf16 %v4150_v3, %v4147_v8  ;;  %v4210_v18 = vadd.f32 %v2965_v21, %v3984_v48 }
 0x454   : > { %v2969_v7 = vpop.eup %2968  ;;  %2986 = vtanh.f32 %v1363_v35  ;;  %v1366_v55 = vadd.f32 %v4108_v19, %v1365_v26  ;;  %v4226_v48 = vadd.f32 %v2967_v32, %v4000_v1 }
 0x455   : > { %v2971_v39 = vpop.eup %2970  ;;  %2988 = vtanh.f32 %v1374_v49  ;;  %2653 = vmatprep.subr.bf16.mxu0 %v4164_v5  ;;  %v4193_v50 = vadd.f32 %v2969_v7, %v3967_v61 }
 0x456   : > { %v2973_v17 = vpop.eup %2972  ;;  %2990 = vtanh.f32 %v1366_v55  ;;  %2655 = vmatpush3.bf16.msra.mxu0 %v4174_v13  ;;  %v4218_v49 = vadd.f32 %v2971_v39, %v3992_v29  ;;  %v4238_v39 = vadd.f32 %v4143_v14, %v4012_v53 }
 0x457   : > { %v2975_v15 = vpop.eup %2974  ;;  %2992 = vtanh.f32 %v1310_v10  ;;  %2657 = vmatprep.subr.bf16.mxu0 %v4179_v45  ;;  %v4197_v12 = vadd.f32 %v2973_v17, %v3971_v40  ;;  %v1326_v10 = vadd.f32 %v4114_v0, %v4108_v19  ;;  %v4223_v7 = vpack.c.bf16 %v4193_v50, %v4210_v18 }
 0x458   : > { %v2977_v38 = vpop.eup %2976  ;;  %2994 = vtanh.f32 %v1315_v27  ;;  %v2506_v25 = vpop.f32.mrb[64].mxu1  ;;  %v4203_v34 = vadd.f32 %v2975_v15, %v3977_v24  ;;  %v1323_v27 = vadd.f32 %v4110_v31, %v4108_v19  ;;  %v4243_v31 = vpack.c.bf16 %v4226_v48, %v4238_v39 }
 0x459   : > { %v2979_v43 = vpop.eup %2978  ;;  %v1387_v41 = vadd.f32 %v2506_v25, %v4108_v19  ;;  %v1378_v62 = vpop.f32.mrb[65].mxu1  ;;  %v4200_v59 = vadd.f32 %v2977_v38, %v3974_v56  ;;  %2996 = vtanh.f32 %v1318_v37 }
 0x45a   : > { %v2981_v60 = vpop.eup %2980  ;;  %v1379_v61 = vadd.f32 %v4108_v19, %v1378_v62  ;;  %v2507_v35 = vpop.f32.mrb[66].mxu1  ;;  %2659 = vmatpush3.bf16.msra.mxu0 %v4190_v44  ;;  %v4233_v29 = vpack.c.bf16 %v4203_v34, %v4218_v49 }
 0x45b   : > { %2998 = vtanh.f32 %v1387_v41  ;;  %v1390_v40 = vadd.f32 %v2507_v35, %v4108_v19  ;;  %v1381_v56 = vpop.f32.mrb[67].mxu1  ;;  %v4215_v24 = vpack.c.bf16 %v4200_v59, %v4197_v12  ;;  %v2983_v0 = vpop.eup %2982  ;;  %v4259_v38 = vadd.f32 %v2981_v60, %v4033_v23 }
 0x45c   : > { %3000 = vtanh.f32 %v1379_v61  ;;  %v1382_v26 = vadd.f32 %v4108_v19, %v1381_v56  ;;  %v4246_v32 = vadd.f32 %v2983_v0, %v4020_v4  ;;  %v4279_v60 = vadd.f32 %v2979_v43, %v4053_v63 }
 0x45d   : > { %v2985_v21 = vpop.eup %2984  ;;  %3002 = vtanh.f32 %v1390_v40  ;;  %2661 = vmatprep.subr.bf16.mxu0 %v4215_v24 }
 0x45e   : > { %v2987_v55 = vpop.eup %2986  ;;  %3004 = vtanh.f32 %v1382_v26  ;;  %2663 = vmatpush3.bf16.msra.mxu0 %v4223_v7  ;;  %v4266_v25 = vadd.f32 %v2985_v21, %v4040_v30  ;;  %v2810_v21 = vld [vmem:[#allocation5 + $0xc0] sm:$0xff]  }
 0x45f   : > { %v2989_v1 = vpop.eup %2988  ;;  %3006 = vtanh.f32 %v1326_v10  ;;  %2665 = vmatprep.subr.bf16.mxu0 %v4233_v29  ;;  %v4249_v37 = vadd.f32 %v2987_v55, %v4023_v58  ;;  %v4317_v55 = vld [vmem:[%s3471_s7] sm:$0xff]  ;;  %s3164_s7 = scalar_lea.vmem %s4475_s12, 640 }
 0x460   : > { %v2991_v19 = vpop.eup %2990  ;;  %3008 = vtanh.f32 %v1323_v27  ;;  %v4255_v14 = vadd.f32 %v2989_v1, %v4029_v28  ;;  %v2811_v27 = vld [vmem:[#allocation5 + $0xc8] sm:$0xff]   ;;  %v2814_v1 = vld [vmem:[#allocation5 + $0xe0] sm:$0xff]   ;;  %p3165_p2 = scmp.ne.s32.totalorder %s4475_s12, %s3164_s7  ;;  %p3172_p8 = scmp.lt.s32.totalorder %s3170_s21, %s3164_s7 }
 0x461   : > { %v2993_v17 = vpop.eup %2992  ;;  %v4252_v53 = vadd.f32 %v2991_v19, %v4026_v57  ;;  %v2670_v57 = vpack.c.bf16 %v4246_v32, %v4259_v38  ;;  %v2815_v19 = vld [vmem:[#allocation5 + $0xe8] sm:$0xff]  }
 0x462   : > { %v2995_v15 = vpop.eup %2994  ;;  %2667 = vmatpush3.bf16.msra.mxu0 %v4243_v31  ;;  %v4271_v28 = vadd.f32 %v2993_v17, %v4045_v20  ;;  %v4276_v23 = vpack.c.bf16 %v4255_v14, %v4266_v25  ;;  %v2816_v17 = vld [vmem:[#allocation5 + $0xf0] sm:$0xff]   ;;  %p3166_p0 = pnand %p3165_p2, %p4552_p5  ;;  %p3173_p4 = por %p3172_p8, %p3171_p13 }
 0x463   : > { %v4263_v4 = vpack.c.bf16 %v4252_v53, %v4249_v37  ;;  %v2997_v58 = vpop.eup %2996  ;;  %v4297_v43 = vadd.f32 %v2995_v15, %v4071_v36  ;;  %v2817_v15 = vld [vmem:[#allocation5 + $0xf8] sm:$0xff]  }
 0x464   : > { %v2674_v20 = vpack.c.bf16 %v4271_v28, %v4279_v60  ;;  %v4285_v61 = vadd.f32 %v2997_v58, %v4059_v42  ;;  %p3167_p11 = pneg %p3166_p0 }
 0x465   : > { %v2999_v41 = vpop.eup %2998  ;;  %2669 = vmatprep.subr.bf16.mxu0 %v4263_v4 }
 0x466   : > { %v3001_v62 = vpop.eup %3000  ;;  %2671 = vmatpush3.bf16.msra.mxu0 %v2670_v57  ;;  %v4302_v26 = vadd.f32 %v2999_v41, %v4076_v11  ;;  %p3174_p7 = pnand %p3173_p4, %p3167_p11 }
 0x467   : > { %v3003_v30 = vpop.eup %3002  ;;  %2673 = vmatprep.subr.bf16.mxu0 %v4276_v23  ;;  %v4288_v40 = vadd.f32 %v3001_v62, %v4062_v46  ;;  %v2678_v46 = vpack.c.bf16 %v4285_v61, %v4297_v43 }
 0x468   : > { %v3005_v10 = vpop.eup %3004  ;;  %v4294_v63 = vadd.f32 %v3003_v30, %v4068_v16 }
 0x469   : > { %v3007_v35 = vpop.eup %3006  ;;  %v4291_v56 = vadd.f32 %v3005_v10, %v4065_v51 }
 0x46a   : > { %2675 = vmatpush3.bf16.msra.mxu0 %v2674_v20  ;;  %v3009_v0 = vpop.eup %3008  ;;  %v4307_v51 = vadd.f32 %v3007_v35, %v4081_v54  ;;  %v2680_v16 = vpack.c.bf16 %v4294_v63, %v4302_v26  ;;  %v2812_v54 = vld [vmem:[#allocation5 + $0xd0] sm:$0xff]  }
 0x46b   : > { %v2676_v42 = vpack.c.bf16 %v4291_v56, %v4288_v40  ;;  %v4312_v36 = vadd.f32 %v3009_v0, %v4086_v47  ;;  %v2813_v47 = vld [vmem:[#allocation5 + $0xd8] sm:$0xff]  }
 0x46d   : > { %2677 = vmatprep.subr.bf16.mxu0 %v2676_v42  ;;  %v2682_v11 = vpack.c.bf16 %v4307_v51, %v4312_v36 }
 0x46e   : > { %2679 = vmatpush3.bf16.msra.mxu0 %v2678_v46 }
 0x46f   : > { %2681 = vmatprep.subr.bf16.mxu0 %v2680_v16 }
 0x472   : > { %2683 = vmatpush3.bf16.msra.mxu0 %v2682_v11 }
 0x473   : > { %2508 = vmatprep.subr.bf16.mxu0 %v2810_v21 }
 0x475   : > { %1522 = vmatmul.mubr.f32.vlgmr.msra.gmra.mrb[2].mxu0 %v4317_v55 }
 0x476   : > { %2509 = vmatpush3.bf16.msra.mxu0 %v2810_v21  ;;  %2524 = vmatprep.mubr.bf16.mxu0 %v4174_v13 }
 0x477   : > { %2510 = vmatprep.subr.bf16.mxu0 %v2811_v27 }
 0x47a   : > { %2511 = vmatpush3.bf16.msra.mxu0 %v2811_v27 }
 0x47b   : > { %2512 = vmatprep.subr.bf16.mxu0 %v2812_v54 }
 0x47e   : > { %2513 = vmatpush3.bf16.msra.mxu0 %v2812_v54 }
 0x47f   : > { %2514 = vmatprep.subr.bf16.mxu0 %v2813_v47 }
 0x482   : > { %2515 = vmatpush3.bf16.msra.mxu0 %v2813_v47 }
 0x483   : > { %2516 = vmatprep.subr.bf16.mxu0 %v2814_v1 }
 0x486   : > { %2517 = vmatpush3.bf16.msra.mxu0 %v2814_v1 }
 0x487   : > { %2518 = vmatprep.subr.bf16.mxu0 %v2815_v19 }
 0x48a   : > { %2519 = vmatpush3.bf16.msra.mxu0 %v2815_v19 }
 0x48b   : > { %2520 = vmatprep.subr.bf16.mxu0 %v2816_v17 }
 0x48e   : > { %2521 = vmatpush3.bf16.msra.mxu0 %v2816_v17 }
 0x48f   : > { %2522 = vmatprep.subr.bf16.mxu0 %v2817_v15 }
 0x492   : > { %2523 = vmatpush3.bf16.msra.mxu0 %v2817_v15 }
 0x495   : > { %2525 = vmatmul.mubr.bf16.vlgmr.msra.gmra.mrb[36].mxu0 %v4190_v44 }
 0x496   : > { %2528 = vmatprep.mubr.bf16.mxu0 %v4223_v7 }
 0x49d   : > { %2529 = vmatmul.mubr.bf16.gmra.mrb[40].mxu0 %v4243_v31 }
 0x49e   : > { %2532 = vmatprep.mubr.bf16.mxu0 %v2670_v57 }
 0x4a5   : > { %2533 = vmatmul.mubr.bf16.gmra.mrb[44].mxu0 %v2674_v20 }
 0x4a6   : > { %2536 = vmatprep.mubr.bf16.mxu0 %v2678_v46 }
 0x4ad   : > { %2537 = vmatmul.mubr.bf16.gmra.mrb[48].mxu0 %v2682_v11 }
 0x4ae   : > { %2540 = vmatprep.mubr.bf16.mxu0 %v4164_v5  ;;  %v4334_v5 = vld [vmem:[%s4527_s2 + $0x3] ss:$0 sm:$0xff] }
 0x4b5   : > { %2541 = vmatmul.mubr.bf16.gmra.mrb[52].mxu0 %v4179_v45 }
 0x4b6   : > { %2544 = vmatprep.mubr.bf16.mxu0 %v4215_v24 }
 0x4bd   : > { %2545 = vmatmul.mubr.bf16.gmra.mrb[56].mxu0 %v4233_v29 }
 0x4be   : > { %2548 = vmatprep.mubr.bf16.mxu0 %v4263_v4 }
 0x4c5   : > { %2549 = vmatmul.mubr.bf16.gmra.mrb[60].mxu0 %v4276_v23 }
 0x4c6   : > { %2552 = vmatprep.mubr.bf16.mxu0 %v2676_v42 }
 0x4cd   : > { %2553 = vmatmul.mubr.bf16.gmra.mrb[64].mxu0 %v2680_v16 }
 0x548   : > { %v2302_v13 = vpop.f32.mrb[2].mxu0 }
 0x549   : > { %v2303_v44 = vpop.f32.mrb[3].mxu0 }
 0x54a   : > { %v2304_v7 = vadd.f32 %v2303_v44, %v2302_v13 }
 0x54c   : > { %2076 = vst [vmem:[%s3648_s8 + $0x18] sm:$0xff] %v2304_v7 }
 0x568   : > { %v2526_v45 = vpop.f32.mrb[36].mxu0 }
 0x569   : > { %v1661_v24 = vadd.f32 %v2526_v45, %v4334_v5  ;;  %v1652_v31 = vpop.f32.mrb[37].mxu0 }
 0x56a   : > { %v1653_v29 = vadd.f32 %v4334_v5, %v1652_v31  ;;  %v2527_v4 = vpop.f32.mrb[38].mxu0 }
 0x56b   : > { %3010 = vtanh.f32 %v1661_v24  ;;  %v1664_v58 = vadd.f32 %v2527_v4, %v4334_v5  ;;  %v1655_v57 = vpop.f32.mrb[39].mxu0 }
 0x56c   : > { %3012 = vtanh.f32 %v1653_v29  ;;  %v1656_v41 = vadd.f32 %v4334_v5, %v1655_v57 }
 0x56d   : > { %3014 = vtanh.f32 %v1664_v58 }
 0x56e   : > { %3016 = vtanh.f32 %v1656_v41 }
 0x570   : > { %v2530_v23 = vpop.f32.mrb[40].mxu0 }
 0x571   : > { %v1677_v62 = vadd.f32 %v2530_v23, %v4334_v5  ;;  %v1668_v30 = vpop.f32.mrb[41].mxu0 }
 0x572   : > { %v1669_v10 = vadd.f32 %v4334_v5, %v1668_v30  ;;  %v2531_v20 = vpop.f32.mrb[42].mxu0 }
 0x573   : > { %3018 = vtanh.f32 %v1677_v62  ;;  %v1680_v35 = vadd.f32 %v2531_v20, %v4334_v5  ;;  %v1671_v0 = vpop.f32.mrb[43].mxu0 }
 0x574   : > { %3020 = vtanh.f32 %v1669_v10  ;;  %v1672_v42 = vadd.f32 %v4334_v5, %v1671_v0 }
 0x575   : > { %v3011_v46 = vpop.eup %3010  ;;  %3022 = vtanh.f32 %v1680_v35 }
 0x576   : > { %v3013_v16 = vpop.eup %3012  ;;  %3024 = vtanh.f32 %v1672_v42  ;;  %v4345_v54 = vadd.f32 %v3011_v46, %v4185_v9 }
 0x577   : > { %v3015_v21 = vpop.eup %3014  ;;  %v4352_v17 = vadd.f32 %v3013_v16, %v4138_v52 }
 0x578   : > { %v3017_v11 = vpop.eup %3016  ;;  %v2534_v27 = vpop.f32.mrb[44].mxu0  ;;  %v4348_v47 = vadd.f32 %v3015_v21, %v4159_v2 }
 0x579   : > { %v1693_v1 = vadd.f32 %v2534_v27, %v4334_v5  ;;  %v1684_v19 = vpop.f32.mrb[45].mxu0  ;;  %v4355_v15 = vadd.f32 %v3017_v11, %v4141_v22 }
 0x57a   : > { %v1685_v13 = vadd.f32 %v4334_v5, %v1684_v19  ;;  %v2535_v44 = vpop.f32.mrb[46].mxu0  ;;  %v2690_v7 = vpack.c.bf16 %v4348_v47, %v4345_v54 }
 0x57b   : > { %3026 = vtanh.f32 %v1693_v1  ;;  %v1696_v9 = vadd.f32 %v2535_v44, %v4334_v5  ;;  %v1687_v2 = vpop.f32.mrb[47].mxu0  ;;  %v2686_v45 = vpack.c.bf16 %v4355_v15, %v4352_v17 }
 0x57c   : > { %3028 = vtanh.f32 %v1685_v13  ;;  %v1688_v52 = vadd.f32 %v4334_v5, %v1687_v2 }
 0x57d   : > { %v3019_v24 = vpop.eup %3018  ;;  %3030 = vtanh.f32 %v1696_v9 }
 0x57e   : > { %v3021_v22 = vpop.eup %3020  ;;  %3032 = vtanh.f32 %v1688_v52  ;;  %v4365_v58 = vadd.f32 %v3019_v24, %v4238_v39 }
 0x57f   : > { %v3023_v31 = vpop.eup %3022  ;;  %v4372_v62 = vadd.f32 %v3021_v22, %v4210_v18 }
 0x580   : > { %v3025_v29 = vpop.eup %3024  ;;  %v2538_v4 = vpop.f32.mrb[48].mxu0  ;;  %v4368_v57 = vadd.f32 %v3023_v31, %v4226_v48 }
 0x581   : > { %v1709_v41 = vadd.f32 %v2538_v4, %v4334_v5  ;;  %v1700_v23 = vpop.f32.mrb[49].mxu0  ;;  %v4375_v30 = vadd.f32 %v3025_v29, %v4193_v50 }
 0x582   : > { %v1701_v10 = vadd.f32 %v4334_v5, %v1700_v23  ;;  %v2539_v20 = vpop.f32.mrb[50].mxu0  ;;  %v2698_v35 = vpack.c.bf16 %v4368_v57, %v4365_v58 }
 0x583   : > { %3034 = vtanh.f32 %v1709_v41  ;;  %v1712_v39 = vadd.f32 %v2539_v20, %v4334_v5  ;;  %v1703_v48 = vpop.f32.mrb[51].mxu0  ;;  %v2694_v0 = vpack.c.bf16 %v4375_v30, %v4372_v62 }
 0x584   : > { %3036 = vtanh.f32 %v1701_v10  ;;  %v1704_v18 = vadd.f32 %v4334_v5, %v1703_v48 }
 0x585   : > { %v3027_v42 = vpop.eup %3026  ;;  %3038 = vtanh.f32 %v1712_v39 }
 0x586   : > { %v3029_v50 = vpop.eup %3028  ;;  %3040 = vtanh.f32 %v1704_v18  ;;  %v4385_v11 = vadd.f32 %v3027_v42, %v4279_v60 }
 0x587   : > { %v3031_v46 = vpop.eup %3030  ;;  %v4392_v13 = vadd.f32 %v3029_v50, %v4259_v38 }
 0x588   : > { %v3033_v16 = vpop.eup %3032  ;;  %v2542_v21 = vpop.f32.mrb[52].mxu0  ;;  %v4388_v27 = vadd.f32 %v3031_v46, %v4271_v28 }
 0x589   : > { %v1725_v1 = vadd.f32 %v2542_v21, %v4334_v5  ;;  %v1716_v19 = vpop.f32.mrb[53].mxu0  ;;  %v4395_v44 = vadd.f32 %v3033_v16, %v4246_v32 }
 0x58a   : > { %v1717_v9 = vadd.f32 %v4334_v5, %v1716_v19  ;;  %v2543_v2 = vpop.f32.mrb[54].mxu0  ;;  %v2706_v52 = vpack.c.bf16 %v4388_v27, %v4385_v11 }
 0x58b   : > { %3042 = vtanh.f32 %v1725_v1  ;;  %v1728_v60 = vadd.f32 %v2543_v2, %v4334_v5  ;;  %v1719_v28 = vpop.f32.mrb[55].mxu0  ;;  %v2702_v24 = vpack.c.bf16 %v4395_v44, %v4392_v13 }
 0x58c   : > { %3044 = vtanh.f32 %v1717_v9  ;;  %v1720_v38 = vadd.f32 %v4334_v5, %v1719_v28 }
 0x58d   : > { %v3035_v22 = vpop.eup %3034  ;;  %3046 = vtanh.f32 %v1728_v60 }
 0x58e   : > { %v3037_v32 = vpop.eup %3036  ;;  %3048 = vtanh.f32 %v1720_v38  ;;  %v4405_v41 = vadd.f32 %v3035_v22, %v4312_v36 }
 0x58f   : > { %v3039_v31 = vpop.eup %3038  ;;  %v4412_v39 = vadd.f32 %v3037_v32, %v4297_v43 }
 0x590   : > { %v3041_v29 = vpop.eup %3040  ;;  %v2546_v4 = vpop.f32.mrb[56].mxu0  ;;  %v4408_v23 = vadd.f32 %v3039_v31, %v4307_v51 }
 0x591   : > { %v1741_v10 = vadd.f32 %v2546_v4, %v4334_v5  ;;  %v1732_v20 = vpop.f32.mrb[57].mxu0  ;;  %v4415_v48 = vadd.f32 %v3041_v29, %v4285_v61 }
 0x592   : > { %v1733_v18 = vadd.f32 %v4334_v5, %v1732_v20  ;;  %v2547_v42 = vpop.f32.mrb[58].mxu0  ;;  %v2714_v50 = vpack.c.bf16 %v4408_v23, %v4405_v41 }
 0x593   : > { %3050 = vtanh.f32 %v1741_v10  ;;  %v1744_v36 = vadd.f32 %v2547_v42, %v4334_v5  ;;  %v1735_v51 = vpop.f32.mrb[59].mxu0  ;;  %v2710_v46 = vpack.c.bf16 %v4415_v48, %v4412_v39 }
 0x594   : > { %3052 = vtanh.f32 %v1733_v18  ;;  %v1736_v43 = vadd.f32 %v4334_v5, %v1735_v51 }
 0x595   : > { %v3043_v16 = vpop.eup %3042  ;;  %3054 = vtanh.f32 %v1744_v36 }
 0x596   : > { %v3045_v61 = vpop.eup %3044  ;;  %3056 = vtanh.f32 %v1736_v43  ;;  %v1829_v9 = vadd.f32 %v3043_v16, %v4167_v6 }
 0x597   : > { %v3047_v21 = vpop.eup %3046  ;;  %v1827_v38 = vadd.f32 %v3045_v61, %v4147_v8 }
 0x598   : > { %v3049_v1 = vpop.eup %3048  ;;  %v2550_v19 = vpop.f32.mrb[60].mxu0  ;;  %v1830_v2 = vadd.f32 %v3047_v21, %v4153_v33 }
 0x599   : > { %v1757_v60 = vadd.f32 %v2550_v19, %v4334_v5  ;;  %v1748_v28 = vpop.f32.mrb[61].mxu0  ;;  %v1828_v22 = vadd.f32 %v3049_v1, %v4150_v3 }
 0x59a   : > { %v1749_v32 = vadd.f32 %v4334_v5, %v1748_v28  ;;  %v2551_v31 = vpop.f32.mrb[62].mxu0  ;;  %v2688_v29 = vpack.c.bf16 %v1830_v2, %v1829_v9 }
 0x59b   : > { %3058 = vtanh.f32 %v1757_v60  ;;  %v1760_v4 = vadd.f32 %v2551_v31, %v4334_v5  ;;  %v1751_v10 = vpop.f32.mrb[63].mxu0  ;;  %v2684_v20 = vpack.c.bf16 %v1828_v22, %v1827_v38 }
 0x59c   : > { %3060 = vtanh.f32 %v1749_v32  ;;  %v1752_v6 = vadd.f32 %v4334_v5, %v1751_v10 }
 0x59d   : > { %v3051_v33 = vpop.eup %3050  ;;  %3062 = vtanh.f32 %v1760_v4  ;;  %2685 = vmatprep.subr.bf16.mxu1 %v2684_v20 }
 0x59e   : > { %v3053_v18 = vpop.eup %3052  ;;  %3064 = vtanh.f32 %v1752_v6  ;;  %2687 = vmatpush3.bf16.msra.mxu1 %v2686_v45  ;;  %v1833_v36 = vadd.f32 %v3051_v33, %v4218_v49 }
 0x59f   : > { %v3055_v8 = vpop.eup %3054  ;;  %2689 = vmatprep.subr.bf16.mxu1 %v2688_v29  ;;  %v1831_v61 = vadd.f32 %v3053_v18, %v4197_v12 }
 0x5a0   : > { %v3057_v3 = vpop.eup %3056  ;;  %v2554_v42 = vpop.f32.mrb[64].mxu0  ;;  %v1834_v51 = vadd.f32 %v3055_v8, %v4203_v34 }
 0x5a1   : > { %v1773_v43 = vadd.f32 %v2554_v42, %v4334_v5  ;;  %v1764_v16 = vpop.f32.mrb[65].mxu0  ;;  %v1832_v21 = vadd.f32 %v3057_v3, %v4200_v59 }
 0x5a2   : > { %v1765_v1 = vadd.f32 %v4334_v5, %v1764_v16  ;;  %v2555_v19 = vpop.f32.mrb[66].mxu0  ;;  %2691 = vmatpush3.bf16.msra.mxu1 %v2690_v7  ;;  %v2696_v17 = vpack.c.bf16 %v1834_v51, %v1833_v36 }
 0x5a3   : > { %3066 = vtanh.f32 %v1773_v43  ;;  %v1776_v49 = vadd.f32 %v2555_v19, %v4334_v5  ;;  %v1767_v15 = vpop.f32.mrb[67].mxu0  ;;  %v2692_v34 = vpack.c.bf16 %v1832_v21, %v1831_v61 }
 0x5a4   : > { %3068 = vtanh.f32 %v1765_v1  ;;  %v1768_v45 = vadd.f32 %v4334_v5, %v1767_v15 }
 0x5a5   : > { %v3059_v9 = vpop.eup %3058  ;;  %3070 = vtanh.f32 %v1776_v49  ;;  %2693 = vmatprep.subr.bf16.mxu1 %v2692_v34 }
 0x5a6   : > { %v3061_v12 = vpop.eup %3060  ;;  %3072 = vtanh.f32 %v1768_v45  ;;  %2695 = vmatpush3.bf16.msra.mxu1 %v2694_v0  ;;  %v1837_v47 = vadd.f32 %v3059_v9, %v4266_v25 }
 0x5a7   : > { %v3063_v59 = vpop.eup %3062  ;;  %2697 = vmatprep.subr.bf16.mxu1 %v2696_v17  ;;  %v1835_v2 = vadd.f32 %v3061_v12, %v4249_v37 }
 0x5a8   : > { %v3065_v54 = vpop.eup %3064  ;;  %v1838_v7 = vadd.f32 %v3063_v59, %v4255_v14 }
 0x5a9   : > { %v1836_v5 = vadd.f32 %v3065_v54, %v4252_v53 }
 0x5aa   : > { %2699 = vmatpush3.bf16.msra.mxu1 %v2698_v35  ;;  %v2704_v60 = vpack.c.bf16 %v1838_v7, %v1837_v47 }
 0x5ab   : > { %v2700_v28 = vpack.c.bf16 %v1836_v5, %v1835_v2 }
 0x5ad   : > { %v3067_v38 = vpop.eup %3066  ;;  %2701 = vmatprep.subr.bf16.mxu1 %v2700_v28 }
 0x5ae   : > { %v3069_v62 = vpop.eup %3068  ;;  %2703 = vmatpush3.bf16.msra.mxu1 %v2702_v24  ;;  %v1841_v53 = vadd.f32 %v3067_v38, %v4302_v26 }
 0x5af   : > { %v3071_v25 = vpop.eup %3070  ;;  %2705 = vmatprep.subr.bf16.mxu1 %v2704_v60  ;;  %v1839_v58 = vadd.f32 %v3069_v62, %v4288_v40 }
 0x5b0   : > { %v3073_v37 = vpop.eup %3072  ;;  %v1842_v14 = vadd.f32 %v3071_v25, %v4294_v63 }
 0x5b1   : > { %v1840_v57 = vadd.f32 %v3073_v37, %v4291_v56 }
 0x5b2   : > { %2707 = vmatpush3.bf16.msra.mxu1 %v2706_v52  ;;  %v2712_v30 = vpack.c.bf16 %v1842_v14, %v1841_v53 }
 0x5b3   : > { %v2708_v35 = vpack.c.bf16 %v1840_v57, %v1839_v58 }
 0x5b5   : > { %2709 = vmatprep.subr.bf16.mxu1 %v2708_v35 }
 0x5b6   : > { %2711 = vmatpush3.bf16.msra.mxu1 %v2710_v46 }
 0x5b7   : > { %2713 = vmatprep.subr.bf16.mxu1 %v2712_v30 }
 0x5ba   : > { %2715 = vmatpush3.bf16.msra.mxu1 %v2714_v50 }
 0x5bd   : > { %1908 = vmatmul.mubr.f32.vlgmr.msra.gmra.mrb[68].mxu1 %v4317_v55 }
 0x690   : > { %v2361_v40 = vpop.f32.mrb[68].mxu1 }
 0x691   : > { %v2362_v56 = vpop.f32.mrb[69].mxu1 }
 0x692   : > { %v2363_v63 = vadd.f32 %v2362_v56, %v2361_v40 }
 0x694   : > { %2087 = vst [vmem:[%s3648_s8 + $0x20] sm:$0xff] %v2363_v63 }
 0x695   : > { %3177 = shalt.err (!%p3174_p7)
}
 0x696   : > { %s3178_s8 = scalar_lea.hbm %s4480_s9, 640  ;;  %s3182_s20 = scalar_lea.hbm %s4529_s4, 1280 }
 0x697   : > { %p3179_p9 = scmp.ne.s32.totalorder %s4480_s9, %s3178_s8  ;;  %p3183_p3 = scmp.lt.u32.totalorder %s4480_s9, %s4529_s4 }
 0x698   : > { %p3184_p10 = scmp.lt.u32.totalorder %s3182_s20, %s3178_s8  ;;  %p3186_p2 = scmp.lt.u32.totalorder %s3178_s8, %s4480_s9 }
 0x699   : > { %p3180_p12 = pnand %p3179_p9, %p4552_p5 }
 0x69a   : > { %p3185_p1 = por %p3184_p10, %p3183_p3 }
 0x69b   : > { %p3181_p6 = pneg %p3180_p12 }
 0x69c   : > { %p3187_p0 = por %p3186_p2, %p3185_p1 }
 0x69e   : > { %p3188_p11 = pnand %p3187_p0, %p3181_p6 }
 0x6a0   : > { %3191 = shalt.err (!%p3188_p11)
}
 0x6a1   : > { %s3248_s13 = smov 128   ;;  %s3249_s0 = smov 256  }
 0x6a2   : > { %s3250_s23 = smov 8  }
 0x6a3   : > { %2725 = dma.vmem_to_hbm [thread:$0]  (%p4552_p5), %s4475_s12, 640, %s4480_s9, %s1916_s6, %s3248_s13, %s3249_s0, %s3250_s23  }
 0x6a4 PF: > { %s1943_s28 = sand.u32 1, %s3226_s15   ;;  %p4553_p13 = scmp.ne.s32.totalorder %s4542_s5, 0 }
 0x6a5   : > { %p4554_p8 = scmp.ge.s32.totalorder %s3238_s18, 2  ;;  %s1944_s24 = scalar_lea.sflag [#allocation4], %s1943_s28 }
 0x6a7   : > { %p2739_p4 = pnand %p4554_p8, %p4553_p13 }
 0x6a9   : > { %3221 = dma.done.wait (!%p2739_p4), %s1944_s24, 640  }
 0x6aa   : > { %3223 = vsyncadd (!%p2739_p4), %s1944_s24, 4294966656  ;;  %p18_p7 = scmp.ge.s32.totalorder %s3297_s19, 4   ;;  %s4555_s15 = smov %s3230_s16 }
 0x6ab   : > { %s4556_s16 = smov %s3234_s17  ;;  %s4557_s17 = smov %s3308_s22 }
 0x6ac   : > { %s4558_s18 = smov %s3297_s19  ;;  %20 = sbr.rel (!%p18_p7) target bundleno = 8 (0x8), region = 106 }
 0x6b3   :  { %1949 = vsyncpa [#allocation3], 1 }
 0x6b4   :  { %1951 = vsyncpa [#allocation3 + $0x1], 1 }
 0x6b5   :  { %1952 = vsyncpa [#allocation6], 1 }
 0x6b6   :  { %1953 = vsyncpa [#allocation4], 1 }
 0x6b7   :  { %1955 = vsyncpa [#allocation4 + $0x1], 1 }

</bundles_post_ra>
